<compile_context>
chip_gen: v6e
topology: v6e:2x2x1
jax: 0.10.0
libtpu: 0.0.40
codegen_flags: <defaults>
</compile_context>

<pallas_src>
import functools

import jax
import jax.numpy as jnp
from jax.experimental import pallas as pl
from jax.experimental.pallas import tpu as pltpu

BN_EPS = 1e-5


def _round_up(x, m):
    return pl.cdiv(x, m) * m


# ---------------------------------------------------------------------------
# Pallas kernel: fused  (X @ W) + shift  ->  activation
# (per-channel scale is pre-folded into W by the wrapper)
# ---------------------------------------------------------------------------
def _fused_matmul_kernel(x_ref, w_ref, shift_ref, o_ref, *, act):
    y = jnp.dot(x_ref[...], w_ref[...], preferred_element_type=jnp.float32)
    y = y + shift_ref[...]
    if act == "relu":
        y = jnp.maximum(y, 0.0)
    elif act == "lrelu":
        y = jnp.where(y > 0.0, y, 0.2 * y)
    elif act == "tanh":
        y = jnp.tanh(y)
    elif act == "none":
        pass
    else:
        raise ValueError(act)
    o_ref[...] = y.astype(o_ref.dtype)


def fused_matmul(x, w, scale, shift, act):
    """x: (M, K), w: (K, N), scale/shift: (N,). Returns (M, N) float32."""
    M, K = x.shape
    N = w.shape[1]

    # Fold the per-channel scale into the weight matrix (trace-time constant).
    w_eff = w.astype(jnp.float32) * scale.astype(jnp.float32)[None, :]

    # Lane-dense padding of K and N; adaptive sublane padding / tiling of M.
    k_pad = _round_up(K, 128)
    n_pad = _round_up(N, 128)
    if M >= 256:
        tm = 256
        m_pad = _round_up(M, 256)
    elif M >= 128:
        tm = 128
        m_pad = _round_up(M, 128)
    else:
        m_pad = _round_up(M, 16)   # keep (8,128)/bf16 packing happy, waste little
        tm = m_pad
    tn = 256 if (n_pad % 256 == 0) else 128

    x_p = jnp.pad(x, ((0, m_pad - M), (0, k_pad - K))).astype(jnp.bfloat16)
    w_p = jnp.pad(w_eff, ((0, k_pad - K), (0, n_pad - N))).astype(jnp.bfloat16)
    shift_p = jnp.pad(shift.astype(jnp.float32), (0, n_pad - N)).reshape(1, n_pad)

    grid = (m_pad // tm, n_pad // tn)
    out = pl.pallas_call(
        functools.partial(_fused_matmul_kernel, act=act),
        out_shape=jax.ShapeDtypeStruct((m_pad, n_pad), jnp.float32),
        grid_spec=pltpu.PrefetchScalarGridSpec(
            num_scalar_prefetch=0,
            grid=grid,
            in_specs=[
                pl.BlockSpec((tm, k_pad), lambda i, j: (i, 0)),
                pl.BlockSpec((k_pad, tn), lambda i, j: (0, j)),
                pl.BlockSpec((1, tn), lambda i, j: (0, j)),
            ],
            out_specs=pl.BlockSpec((tm, tn), lambda i, j: (i, j)),
        ),
        compiler_params=pltpu.CompilerParams(
            dimension_semantics=("parallel", "parallel")
        ),
    )(x_p, w_p, shift_p)
    return out[:M, :N]


# ---------------------------------------------------------------------------
# im2col glue (NHWC)
# ---------------------------------------------------------------------------
def _im2col(x, kh, kw, stride):
    n, h, w, c = x.shape
    oh = (h - kh) // stride + 1
    ow = (w - kw) // stride + 1
    cols = []
    for di in range(kh):
        for dj in range(kw):
            cols.append(
                x[:, di: di + stride * (oh - 1) + 1: stride,
                     dj: dj + stride * (ow - 1) + 1: stride, :]
            )
    patches = jnp.concatenate(cols, axis=-1).reshape(n * oh * ow, kh * kw * c)
    return patches, oh, ow


def conv2d(x_nhwc, w_oihw, scale, shift, act, stride):
    """Conv2d, padding=0 (explicit padding done by caller)."""
    cout, cin, kh, kw = w_oihw.shape
    n = x_nhwc.shape[0]
    patches, oh, ow = _im2col(x_nhwc, kh, kw, stride)
    # (Cout, Cin, KH, KW) -> (KH, KW, Cin, Cout) -> (KH*KW*Cin, Cout)
    wmat = jnp.transpose(w_oihw, (2, 3, 1, 0)).reshape(kh * kw * cin, cout)
    out = fused_matmul(patches, wmat, scale, shift, act)
    return out.reshape(n, oh, ow, cout)


def conv_transpose2d_s1(x_nhwc, w_iohw, scale, shift, act, padding=0):
    """ConvTranspose2d with stride=1: ordinary conv with flipped kernel."""
    cin, cout, kh, kw = w_iohw.shape
    ph, pw = kh - 1 - padding, kw - 1 - padding
    xp = jnp.pad(x_nhwc, ((0, 0), (ph, ph), (pw, pw), (0, 0)))
    w_conv = jnp.transpose(w_iohw[:, :, ::-1, ::-1], (1, 0, 2, 3))
    return conv2d(xp, w_conv, scale, shift, act, stride=1)


def _convt_s2k4p1_weight(w_t):
    """ConvTranspose2d(k=4, s=2, p=1) weight (Cin, Cout, 4, 4) ->
    (9*Cin, 4*Cout) matrix acting on 3x3 patches of the 1-padded input.
    Output columns are ordered (parity_y, parity_x, Cout).

    1-D derivation (y output index, t = y // 2):
      even rows:  out[2t]   = xpad[t]  *W[3] + xpad[t+1]*W[1]
      odd  rows:  out[2t+1] = xpad[t+1]*W[2] + xpad[t+2]*W[0]
    where xpad = input padded by one zero on each side.
    """
    cin, cout = w_t.shape[0], w_t.shape[1]
    zero = jnp.zeros((cin, cout), w_t.dtype)
    # (parity, patch offset d in 0..2) -> contributing kernel tap (or missing).
    tap = {(0, 0): 3, (0, 1): 1, (1, 1): 2, (1, 2): 0}
    rows = []
    for dy in range(3):
        cols = []
        for dx in range(3):
            sub = []
            for py in range(2):
                for px in range(2):
                    ky = tap.get((py, dy))
                    kx = tap.get((px, dx))
                    if ky is None or kx is None:
                        sub.append(zero)
                    else:
                        sub.append(w_t[:, :, ky, kx])
            cols.append(jnp.concatenate(sub, axis=1))    # (cin, 4*cout)
        rows.append(jnp.stack(cols, axis=0))             # (3, cin, 4*cout)
    wbig = jnp.stack(rows, axis=0)                       # (3, 3, cin, 4*cout)
    return wbig.reshape(9 * cin, 4 * cout)


def conv_transpose2d_s2k4p1(x_nhwc, w_iohw, scale, shift, act):
    """ConvTranspose2d(kernel=4, stride=2, padding=1) via the sub-pixel
    decomposition: one matmul on 3x3 patches of the (1-padded, undilated)
    input; the 4 output-parity phases are the last-axis column blocks and are
    interleaved back with a reshape/transpose."""
    n, h, w, cin = x_nhwc.shape
    cout = w_iohw.shape[1]
    xp = jnp.pad(x_nhwc, ((0, 0), (1, 1), (1, 1), (0, 0)))
    patches, oh, ow = _im2col(xp, 3, 3, 1)               # oh == h, ow == w
    wbig = _convt_s2k4p1_weight(w_iohw)                  # (9*cin, 4*cout)
    y = fused_matmul(patches, wbig, jnp.tile(scale, 4), jnp.tile(shift, 4), act)
    y = y.reshape(n, h, w, 2, 2, cout)                   # (n, ty, tx, py, px, c)
    y = jnp.transpose(y, (0, 1, 3, 2, 4, 5)).reshape(n, 2 * h, 2 * w, cout)
    return y


def rep_pad(x_nhwc):
    return jnp.pad(x_nhwc, ((0, 0), (1, 1), (1, 1), (0, 0)), mode="edge")


# ---------------------------------------------------------------------------
# Parameter construction (deterministic, PyTorch-shaped)
# ---------------------------------------------------------------------------
def init_params(key, nf, im_depth, code_size):
    ks = iter(jax.random.split(key, 64))
    p = {}

    def conv_w(cout, cin, k):
        return 0.05 * jax.random.normal(next(ks), (cout, cin, k, k), jnp.float32)

    def convt_w(cin, cout, k):
        return 0.05 * jax.random.normal(next(ks), (cin, cout, k, k), jnp.float32)

    def bn(c):
        gamma = 1.0 + 0.1 * jax.random.normal(next(ks), (c,), jnp.float32)
        beta = 0.1 * jax.random.normal(next(ks), (c,), jnp.float32)
        run_mean = jnp.zeros((c,), jnp.float32)
        run_var = jnp.ones((c,), jnp.float32)
        return gamma, beta, run_mean, run_var

    def bias(c):
        return 0.05 * jax.random.normal(next(ks), (c,), jnp.float32)

    # encoder
    p["e1_w"] = conv_w(nf, im_depth, 4)
    p["e2_w"] = conv_w(nf * 2, nf, 4);        p["e2_bn"] = bn(nf * 2)
    p["e3_w"] = conv_w(nf * 4, nf * 2, 4);    p["e3_bn"] = bn(nf * 4)
    p["e4_w"] = conv_w(nf * 8, nf * 4, 4);    p["e4_bn"] = bn(nf * 8)
    p["e5_w"] = conv_w(code_size, nf * 8, 2); p["e5_b"] = bias(code_size)
    # decoder
    p["d1_w"] = convt_w(code_size, nf * 8, 2); p["d1_b"] = bias(nf * 8); p["d1_bn"] = bn(nf * 8)
    p["d2_w"] = convt_w(nf * 8, nf * 4, 4);    p["d2_b"] = bias(nf * 4); p["d2_bn"] = bn(nf * 4)
    p["d3_w"] = convt_w(nf * 4, nf * 2, 4);    p["d3_b"] = bias(nf * 2); p["d3_bn"] = bn(nf * 2)
    p["d4_w"] = convt_w(nf * 2, nf, 4);        p["d4_b"] = bias(nf);     p["d4_bn"] = bn(nf)
    p["d5_w"] = convt_w(nf, im_depth, 4);      p["d5_b"] = bias(im_depth)
    return p


def _bn_fold(bn_params, bias=None):
    gamma, beta, mean, var = bn_params
    scale = gamma / jnp.sqrt(var + BN_EPS)
    shift = beta - mean * scale
    if bias is not None:
        shift = shift + scale * bias
    return scale, shift


# ---------------------------------------------------------------------------
# Forward pass
# ---------------------------------------------------------------------------
def autoencoder_conv_forward(params, x_nchw):
    p = params
    x = jnp.transpose(x_nchw, (0, 2, 3, 1))  # NCHW -> NHWC

    ones = lambda c: jnp.ones((c,), jnp.float32)
    zeros = lambda c: jnp.zeros((c,), jnp.float32)

    # ---- encoder ----
    c = p["e1_w"].shape[0]
    x = conv2d(rep_pad(x), p["e1_w"], ones(c), zeros(c), "relu", stride=2)
    s, b = _bn_fold(p["e2_bn"])
    x = conv2d(rep_pad(x), p["e2_w"], s, b, "relu", stride=2)
    s, b = _bn_fold(p["e3_bn"])
    x = conv2d(rep_pad(x), p["e3_w"], s, b, "relu", stride=2)
    s, b = _bn_fold(p["e4_bn"])
    x = conv2d(rep_pad(x), p["e4_w"], s, b, "relu", stride=2)
    c = p["e5_w"].shape[0]
    x = conv2d(x, p["e5_w"], ones(c), p["e5_b"], "relu", stride=1)

    # ---- decoder ----
    s, b = _bn_fold(p["d1_bn"], p["d1_b"])
    x = conv_transpose2d_s1(x, p["d1_w"], s, b, "lrelu", padding=0)
    s, b = _bn_fold(p["d2_bn"], p["d2_b"])
    x = conv_transpose2d_s2k4p1(x, p["d2_w"], s, b, "lrelu")
    s, b = _bn_fold(p["d3_bn"], p["d3_b"])
    x = conv_transpose2d_s2k4p1(x, p["d3_w"], s, b, "lrelu")
    s, b = _bn_fold(p["d4_bn"], p["d4_b"])
    x = conv_transpose2d_s2k4p1(x, p["d4_w"], s, b, "lrelu")
    c = p["d5_w"].shape[1]
    x = conv_transpose2d_s2k4p1(x, p["d5_w"], ones(c), p["d5_b"], "tanh")

    return jnp.transpose(x, (0, 3, 1, 2))  # NHWC -> NCHW


# ---------------------------------------------------------------------------
if __name__ == "__main__":
    # Small but structurally faithful configuration.
    NF, IM_DEPTH, CODE_SIZE = 8, 3, 16
    BATCH, SPATIAL = 2, 32  # 32 -> 16 -> 8 -> 4 -> 2 -> 1 (code) -> ... -> 32

    key = jax.random.PRNGKey(0)
    k_params, k_x = jax.random.split(key)
    params = init_params(k_params, NF, IM_DEPTH, CODE_SIZE)
    x = jax.random.normal(k_x, (BATCH, IM_DEPTH, SPATIAL, SPATIAL), jnp.float32)

    fwd = jax.jit(functools.partial(autoencoder_conv_forward, params))
    out = fwd(x)
    out = jax.block_until_ready(out)

    assert out.shape == (BATCH, IM_DEPTH, SPATIAL, SPATIAL), out.shape
    assert bool(jnp.all(jnp.isfinite(out)))
    assert bool(jnp.all(jnp.abs(out) <= 1.0 + 1e-6))  # tanh output range
    print("KERNEL_OK")
</pallas_src>

<mosaic_0001>
module attributes {stable_mosaic.version = 11 : i64} {
  func.func @_fused_matmul_kernel(%arg0: i32, %arg1: i32, %arg2: memref<256x128xbf16, #tpu.memory_space<vmem>>, %arg3: memref<128x128xbf16, #tpu.memory_space<vmem>>, %arg4: memref<1x128xf32, #tpu.memory_space<vmem>>, %arg5: memref<256x128xf32, #tpu.memory_space<vmem>>) attributes {dimension_semantics = [#tpu.dimension_semantics<parallel>, #tpu.dimension_semantics<parallel>], iteration_bounds = array<i64: 2, 1>, scalar_prefetch = 0 : i64, scratch_operands = 0 : i64, tpu.core_type = #tpu.core_type<tc>, window_params = [{transform_indices = @transform_0, window_bounds = array<i64: 256, 128>}, {transform_indices = @transform_1, window_bounds = array<i64: 128, 128>}, {transform_indices = @transform_2, window_bounds = array<i64: 1, 128>}, {transform_indices = @transform_3, window_bounds = array<i64: 256, 128>}]} {
    %c0 = arith.constant 0 : index
    %c0_0 = arith.constant 0 : index
    %0 = vector.load %arg2[%c0, %c0_0] : memref<256x128xbf16, #tpu.memory_space<vmem>>, vector<256x128xbf16>
    %c0_1 = arith.constant 0 : index
    %c0_2 = arith.constant 0 : index
    %1 = vector.load %arg3[%c0_1, %c0_2] : memref<128x128xbf16, #tpu.memory_space<vmem>>, vector<128x128xbf16>
    %cst = arith.constant dense<0.000000e+00> : vector<256x128xf32>
    %2 = tpu.matmul %0, %1, %cst {dimension_numbers = #tpu.dot_dimension_numbers<[1], [0], [0], [1], [0, 0, 1, 1], [], []>} : vector<256x128xbf16>, vector<128x128xbf16>, vector<256x128xf32> -> vector<256x128xf32>
    %c0_3 = arith.constant 0 : index
    %c0_4 = arith.constant 0 : index
    %3 = vector.load %arg4[%c0_3, %c0_4] : memref<1x128xf32, #tpu.memory_space<vmem>>, vector<1x128xf32>
    %4 = vector.broadcast %3 : vector<1x128xf32> to vector<256x128xf32>
    %5 = arith.addf %2, %4 : vector<256x128xf32>
    %cst_5 = arith.constant 0.000000e+00 : f32
    %6 = vector.broadcast %cst_5 : f32 to vector<256x128xf32>
    %7 = arith.maximumf %5, %6 : vector<256x128xf32>
    %c0_6 = arith.constant 0 : index
    %c0_7 = arith.constant 0 : index
    %8 = vector.load %arg5[%c0_6, %c0_7] : memref<256x128xf32, #tpu.memory_space<vmem>>, vector<256x128xf32>
    tpu.vector_store %arg5[%c0_6, %c0_7], %7 {strides = array<i32>} : memref<256x128xf32, #tpu.memory_space<vmem>>, vector<256x128xf32>,
    return
  }
  func.func @transform_0(%arg0: i32, %arg1: i32) -> (i32, i32) {
    %c0_i32 = arith.constant 0 : i32
    %c0_i32_0 = arith.constant 0 : i32
    return %arg0, %c0_i32 : i32, i32
  }
  func.func @transform_1(%arg0: i32, %arg1: i32) -> (i32, i32) {
    %c0_i32 = arith.constant 0 : i32
    %c0_i32_0 = arith.constant 0 : i32
    return %c0_i32, %arg1 : i32, i32
  }
  func.func @transform_2(%arg0: i32, %arg1: i32) -> (i32, i32) {
    %c0_i32 = arith.constant 0 : i32
    %c0_i32_0 = arith.constant 0 : i32
    return %c0_i32, %arg1 : i32, i32
  }
  func.func @transform_3(%arg0: i32, %arg1: i32) -> (i32, i32) {
    %c0_i32 = arith.constant 0 : i32
    return %arg0, %arg1 : i32, i32
  }
}

module attributes {stable_mosaic.version = 11 : i64} {
  func.func @_fused_matmul_kernel(%arg0: i32, %arg1: i32, %arg2: memref<128x128xbf16, #tpu.memory_space<vmem>>, %arg3: memref<128x128xbf16, #tpu.memory_space<vmem>>, %arg4: memref<1x128xf32, #tpu.memory_space<vmem>>, %arg5: memref<128x128xf32, #tpu.memory_space<vmem>>) attributes {dimension_semantics = [#tpu.dimension_semantics<parallel>, #tpu.dimension_semantics<parallel>], iteration_bounds = array<i64: 1, 1>, scalar_prefetch = 0 : i64, scratch_operands = 0 : i64, tpu.core_type = #tpu.core_type<tc>, window_params = [{transform_indices = @transform_0, window_bounds = array<i64: 128, 128>}, {transform_indices = @transform_1, window_bounds = array<i64: 128, 128>}, {transform_indices = @transform_2, window_bounds = array<i64: 1, 128>}, {transform_indices = @transform_3, window_bounds = array<i64: 128, 128>}]} {
    %c0 = arith.constant 0 : index
    %c0_0 = arith.constant 0 : index
    %0 = vector.load %arg2[%c0, %c0_0] : memref<128x128xbf16, #tpu.memory_space<vmem>>, vector<128x128xbf16>
    %c0_1 = arith.constant 0 : index
    %c0_2 = arith.constant 0 : index
    %1 = vector.load %arg3[%c0_1, %c0_2] : memref<128x128xbf16, #tpu.memory_space<vmem>>, vector<128x128xbf16>
    %cst = arith.constant dense<0.000000e+00> : vector<128x128xf32>
    %2 = tpu.matmul %0, %1, %cst {dimension_numbers = #tpu.dot_dimension_numbers<[1], [0], [0], [1], [0, 0, 1, 1], [], []>} : vector<128x128xbf16>, vector<128x128xbf16>, vector<128x128xf32> -> vector<128x128xf32>
    %c0_3 = arith.constant 0 : index
    %c0_4 = arith.constant 0 : index
    %3 = vector.load %arg4[%c0_3, %c0_4] : memref<1x128xf32, #tpu.memory_space<vmem>>, vector<1x128xf32>
    %4 = vector.broadcast %3 : vector<1x128xf32> to vector<128x128xf32>
    %5 = arith.addf %2, %4 : vector<128x128xf32>
    %cst_5 = arith.constant 0.000000e+00 : f32
    %6 = vector.broadcast %cst_5 : f32 to vector<128x128xf32>
    %7 = arith.maximumf %5, %6 : vector<128x128xf32>
    %c0_6 = arith.constant 0 : index
    %c0_7 = arith.constant 0 : index
    %8 = vector.load %arg5[%c0_6, %c0_7] : memref<128x128xf32, #tpu.memory_space<vmem>>, vector<128x128xf32>
    tpu.vector_store %arg5[%c0_6, %c0_7], %7 {strides = array<i32>} : memref<128x128xf32, #tpu.memory_space<vmem>>, vector<128x128xf32>,
    return
  }
  func.func @transform_0(%arg0: i32, %arg1: i32) -> (i32, i32) {
    %c0_i32 = arith.constant 0 : i32
    %c0_i32_0 = arith.constant 0 : i32
    return %arg0, %c0_i32 : i32, i32
  }
  func.func @transform_1(%arg0: i32, %arg1: i32) -> (i32, i32) {
    %c0_i32 = arith.constant 0 : i32
    %c0_i32_0 = arith.constant 0 : i32
    return %c0_i32, %arg1 : i32, i32
  }
  func.func @transform_2(%arg0: i32, %arg1: i32) -> (i32, i32) {
    %c0_i32 = arith.constant 0 : i32
    %c0_i32_0 = arith.constant 0 : i32
    return %c0_i32, %arg1 : i32, i32
  }
  func.func @transform_3(%arg0: i32, %arg1: i32) -> (i32, i32) {
    %c0_i32 = arith.constant 0 : i32
    return %arg0, %arg1 : i32, i32
  }
}

module attributes {stable_mosaic.version = 11 : i64} {
  func.func @_fused_matmul_kernel(%arg0: i32, %arg1: i32, %arg2: memref<32x256xbf16, #tpu.memory_space<vmem>>, %arg3: memref<256x128xbf16, #tpu.memory_space<vmem>>, %arg4: memref<1x128xf32, #tpu.memory_space<vmem>>, %arg5: memref<32x128xf32, #tpu.memory_space<vmem>>) attributes {dimension_semantics = [#tpu.dimension_semantics<parallel>, #tpu.dimension_semantics<parallel>], iteration_bounds = array<i64: 1, 1>, scalar_prefetch = 0 : i64, scratch_operands = 0 : i64, tpu.core_type = #tpu.core_type<tc>, window_params = [{transform_indices = @transform_0, window_bounds = array<i64: 32, 256>}, {transform_indices = @transform_1, window_bounds = array<i64: 256, 128>}, {transform_indices = @transform_2, window_bounds = array<i64: 1, 128>}, {transform_indices = @transform_3, window_bounds = array<i64: 32, 128>}]} {
    %c0 = arith.constant 0 : index
    %c0_0 = arith.constant 0 : index
    %0 = vector.load %arg2[%c0, %c0_0] : memref<32x256xbf16, #tpu.memory_space<vmem>>, vector<32x256xbf16>
    %c0_1 = arith.constant 0 : index
    %c0_2 = arith.constant 0 : index
    %1 = vector.load %arg3[%c0_1, %c0_2] : memref<256x128xbf16, #tpu.memory_space<vmem>>, vector<256x128xbf16>
    %cst = arith.constant dense<0.000000e+00> : vector<32x128xf32>
    %2 = tpu.matmul %0, %1, %cst {dimension_numbers = #tpu.dot_dimension_numbers<[1], [0], [0], [1], [0, 0, 1, 1], [], []>} : vector<32x256xbf16>, vector<256x128xbf16>, vector<32x128xf32> -> vector<32x128xf32>
    %c0_3 = arith.constant 0 : index
    %c0_4 = arith.constant 0 : index
    %3 = vector.load %arg4[%c0_3, %c0_4] : memref<1x128xf32, #tpu.memory_space<vmem>>, vector<1x128xf32>
    %4 = vector.broadcast %3 : vector<1x128xf32> to vector<32x128xf32>
    %5 = arith.addf %2, %4 : vector<32x128xf32>
    %cst_5 = arith.constant 0.000000e+00 : f32
    %6 = vector.broadcast %cst_5 : f32 to vector<32x128xf32>
    %7 = arith.maximumf %5, %6 : vector<32x128xf32>
    %c0_6 = arith.constant 0 : index
    %c0_7 = arith.constant 0 : index
    %8 = vector.load %arg5[%c0_6, %c0_7] : memref<32x128xf32, #tpu.memory_space<vmem>>, vector<32x128xf32>
    tpu.vector_store %arg5[%c0_6, %c0_7], %7 {strides = array<i32>} : memref<32x128xf32, #tpu.memory_space<vmem>>, vector<32x128xf32>,
    return
  }
  func.func @transform_0(%arg0: i32, %arg1: i32) -> (i32, i32) {
    %c0_i32 = arith.constant 0 : i32
    %c0_i32_0 = arith.constant 0 : i32
    return %arg0, %c0_i32 : i32, i32
  }
  func.func @transform_1(%arg0: i32, %arg1: i32) -> (i32, i32) {
    %c0_i32 = arith.constant 0 : i32
    %c0_i32_0 = arith.constant 0 : i32
    return %c0_i32, %arg1 : i32, i32
  }
  func.func @transform_2(%arg0: i32, %arg1: i32) -> (i32, i32) {
    %c0_i32 = arith.constant 0 : i32
    %c0_i32_0 = arith.constant 0 : i32
    return %c0_i32, %arg1 : i32, i32
  }
  func.func @transform_3(%arg0: i32, %arg1: i32) -> (i32, i32) {
    %c0_i32 = arith.constant 0 : i32
    return %arg0, %arg1 : i32, i32
  }
}

module attributes {stable_mosaic.version = 11 : i64} {
  func.func @_fused_matmul_kernel(%arg0: i32, %arg1: i32, %arg2: memref<16x512xbf16, #tpu.memory_space<vmem>>, %arg3: memref<512x128xbf16, #tpu.memory_space<vmem>>, %arg4: memref<1x128xf32, #tpu.memory_space<vmem>>, %arg5: memref<16x128xf32, #tpu.memory_space<vmem>>) attributes {dimension_semantics = [#tpu.dimension_semantics<parallel>, #tpu.dimension_semantics<parallel>], iteration_bounds = array<i64: 1, 1>, scalar_prefetch = 0 : i64, scratch_operands = 0 : i64, tpu.core_type = #tpu.core_type<tc>, window_params = [{transform_indices = @transform_0, window_bounds = array<i64: 16, 512>}, {transform_indices = @transform_1, window_bounds = array<i64: 512, 128>}, {transform_indices = @transform_2, window_bounds = array<i64: 1, 128>}, {transform_indices = @transform_3, window_bounds = array<i64: 16, 128>}]} {
    %c0 = arith.constant 0 : index
    %c0_0 = arith.constant 0 : index
    %0 = vector.load %arg2[%c0, %c0_0] : memref<16x512xbf16, #tpu.memory_space<vmem>>, vector<16x512xbf16>
    %c0_1 = arith.constant 0 : index
    %c0_2 = arith.constant 0 : index
    %1 = vector.load %arg3[%c0_1, %c0_2] : memref<512x128xbf16, #tpu.memory_space<vmem>>, vector<512x128xbf16>
    %cst = arith.constant dense<0.000000e+00> : vector<16x128xf32>
    %2 = tpu.matmul %0, %1, %cst {dimension_numbers = #tpu.dot_dimension_numbers<[1], [0], [0], [1], [0, 0, 1, 1], [], []>} : vector<16x512xbf16>, vector<512x128xbf16>, vector<16x128xf32> -> vector<16x128xf32>
    %c0_3 = arith.constant 0 : index
    %c0_4 = arith.constant 0 : index
    %3 = vector.load %arg4[%c0_3, %c0_4] : memref<1x128xf32, #tpu.memory_space<vmem>>, vector<1x128xf32>
    %4 = vector.broadcast %3 : vector<1x128xf32> to vector<16x128xf32>
    %5 = arith.addf %2, %4 : vector<16x128xf32>
    %cst_5 = arith.constant 0.000000e+00 : f32
    %6 = vector.broadcast %cst_5 : f32 to vector<16x128xf32>
    %7 = arith.maximumf %5, %6 : vector<16x128xf32>
    %c0_6 = arith.constant 0 : index
    %c0_7 = arith.constant 0 : index
    %8 = vector.load %arg5[%c0_6, %c0_7] : memref<16x128xf32, #tpu.memory_space<vmem>>, vector<16x128xf32>
    tpu.vector_store %arg5[%c0_6, %c0_7], %7 {strides = array<i32>} : memref<16x128xf32, #tpu.memory_space<vmem>>, vector<16x128xf32>,
    return
  }
  func.func @transform_0(%arg0: i32, %arg1: i32) -> (i32, i32) {
    %c0_i32 = arith.constant 0 : i32
    %c0_i32_0 = arith.constant 0 : i32
    return %arg0, %c0_i32 : i32, i32
  }
  func.func @transform_1(%arg0: i32, %arg1: i32) -> (i32, i32) {
    %c0_i32 = arith.constant 0 : i32
    %c0_i32_0 = arith.constant 0 : i32
    return %c0_i32, %arg1 : i32, i32
  }
  func.func @transform_2(%arg0: i32, %arg1: i32) -> (i32, i32) {
    %c0_i32 = arith.constant 0 : i32
    %c0_i32_0 = arith.constant 0 : i32
    return %c0_i32, %arg1 : i32, i32
  }
  func.func @transform_3(%arg0: i32, %arg1: i32) -> (i32, i32) {
    %c0_i32 = arith.constant 0 : i32
    return %arg0, %arg1 : i32, i32
  }
}

module attributes {stable_mosaic.version = 11 : i64} {
  func.func @_fused_matmul_kernel(%arg0: i32, %arg1: i32, %arg2: memref<16x256xbf16, #tpu.memory_space<vmem>>, %arg3: memref<256x128xbf16, #tpu.memory_space<vmem>>, %arg4: memref<1x128xf32, #tpu.memory_space<vmem>>, %arg5: memref<16x128xf32, #tpu.memory_space<vmem>>) attributes {dimension_semantics = [#tpu.dimension_semantics<parallel>, #tpu.dimension_semantics<parallel>], iteration_bounds = array<i64: 1, 1>, scalar_prefetch = 0 : i64, scratch_operands = 0 : i64, tpu.core_type = #tpu.core_type<tc>, window_params = [{transform_indices = @transform_0, window_bounds = array<i64: 16, 256>}, {transform_indices = @transform_1, window_bounds = array<i64: 256, 128>}, {transform_indices = @transform_2, window_bounds = array<i64: 1, 128>}, {transform_indices = @transform_3, window_bounds = array<i64: 16, 128>}]} {
    %c0 = arith.constant 0 : index
    %c0_0 = arith.constant 0 : index
    %0 = vector.load %arg2[%c0, %c0_0] : memref<16x256xbf16, #tpu.memory_space<vmem>>, vector<16x256xbf16>
    %c0_1 = arith.constant 0 : index
    %c0_2 = arith.constant 0 : index
    %1 = vector.load %arg3[%c0_1, %c0_2] : memref<256x128xbf16, #tpu.memory_space<vmem>>, vector<256x128xbf16>
    %cst = arith.constant dense<0.000000e+00> : vector<16x128xf32>
    %2 = tpu.matmul %0, %1, %cst {dimension_numbers = #tpu.dot_dimension_numbers<[1], [0], [0], [1], [0, 0, 1, 1], [], []>} : vector<16x256xbf16>, vector<256x128xbf16>, vector<16x128xf32> -> vector<16x128xf32>
    %c0_3 = arith.constant 0 : index
    %c0_4 = arith.constant 0 : index
    %3 = vector.load %arg4[%c0_3, %c0_4] : memref<1x128xf32, #tpu.memory_space<vmem>>, vector<1x128xf32>
    %4 = vector.broadcast %3 : vector<1x128xf32> to vector<16x128xf32>
    %5 = arith.addf %2, %4 : vector<16x128xf32>
    %cst_5 = arith.constant 0.000000e+00 : f32
    %6 = vector.broadcast %cst_5 : f32 to vector<16x128xf32>
    %7 = arith.maximumf %5, %6 : vector<16x128xf32>
    %c0_6 = arith.constant 0 : index
    %c0_7 = arith.constant 0 : index
    %8 = vector.load %arg5[%c0_6, %c0_7] : memref<16x128xf32, #tpu.memory_space<vmem>>, vector<16x128xf32>
    tpu.vector_store %arg5[%c0_6, %c0_7], %7 {strides = array<i32>} : memref<16x128xf32, #tpu.memory_space<vmem>>, vector<16x128xf32>,
    return
  }
  func.func @transform_0(%arg0: i32, %arg1: i32) -> (i32, i32) {
    %c0_i32 = arith.constant 0 : i32
    %c0_i32_0 = arith.constant 0 : i32
    return %arg0, %c0_i32 : i32, i32
  }
  func.func @transform_1(%arg0: i32, %arg1: i32) -> (i32, i32) {
    %c0_i32 = arith.constant 0 : i32
    %c0_i32_0 = arith.constant 0 : i32
    return %c0_i32, %arg1 : i32, i32
  }
  func.func @transform_2(%arg0: i32, %arg1: i32) -> (i32, i32) {
    %c0_i32 = arith.constant 0 : i32
    %c0_i32_0 = arith.constant 0 : i32
    return %c0_i32, %arg1 : i32, i32
  }
  func.func @transform_3(%arg0: i32, %arg1: i32) -> (i32, i32) {
    %c0_i32 = arith.constant 0 : i32
    return %arg0, %arg1 : i32, i32
  }
}

module attributes {stable_mosaic.version = 11 : i64} {
  func.func @_fused_matmul_kernel(%arg0: i32, %arg1: i32, %arg2: memref<16x128xbf16, #tpu.memory_space<vmem>>, %arg3: memref<128x128xbf16, #tpu.memory_space<vmem>>, %arg4: memref<1x128xf32, #tpu.memory_space<vmem>>, %arg5: memref<16x128xf32, #tpu.memory_space<vmem>>) attributes {dimension_semantics = [#tpu.dimension_semantics<parallel>, #tpu.dimension_semantics<parallel>], iteration_bounds = array<i64: 1, 1>, scalar_prefetch = 0 : i64, scratch_operands = 0 : i64, tpu.core_type = #tpu.core_type<tc>, window_params = [{transform_indices = @transform_0, window_bounds = array<i64: 16, 128>}, {transform_indices = @transform_1, window_bounds = array<i64: 128, 128>}, {transform_indices = @transform_2, window_bounds = array<i64: 1, 128>}, {transform_indices = @transform_3, window_bounds = array<i64: 16, 128>}]} {
    %c0 = arith.constant 0 : index
    %c0_0 = arith.constant 0 : index
    %0 = vector.load %arg2[%c0, %c0_0] : memref<16x128xbf16, #tpu.memory_space<vmem>>, vector<16x128xbf16>
    %c0_1 = arith.constant 0 : index
    %c0_2 = arith.constant 0 : index
    %1 = vector.load %arg3[%c0_1, %c0_2] : memref<128x128xbf16, #tpu.memory_space<vmem>>, vector<128x128xbf16>
    %cst = arith.constant dense<0.000000e+00> : vector<16x128xf32>
    %2 = tpu.matmul %0, %1, %cst {dimension_numbers = #tpu.dot_dimension_numbers<[1], [0], [0], [1], [0, 0, 1, 1], [], []>} : vector<16x128xbf16>, vector<128x128xbf16>, vector<16x128xf32> -> vector<16x128xf32>
    %c0_3 = arith.constant 0 : index
    %c0_4 = arith.constant 0 : index
    %3 = vector.load %arg4[%c0_3, %c0_4] : memref<1x128xf32, #tpu.memory_space<vmem>>, vector<1x128xf32>
    %4 = vector.broadcast %3 : vector<1x128xf32> to vector<16x128xf32>
    %5 = arith.addf %2, %4 : vector<16x128xf32>
    %cst_5 = arith.constant 0.000000e+00 : f32
    %6 = vector.broadcast %cst_5 : f32 to vector<16x128xf32>
    %7 = arith.cmpf ogt, %5, %6 : vector<16x128xf32>
    %cst_6 = arith.constant 2.000000e-01 : f32
    %8 = vector.broadcast %cst_6 : f32 to vector<16x128xf32>
    %9 = arith.mulf %8, %5 : vector<16x128xf32>
    %10 = arith.select %7, %5, %9 : vector<16x128xi1>, vector<16x128xf32>
    %c0_7 = arith.constant 0 : index
    %c0_8 = arith.constant 0 : index
    %11 = vector.load %arg5[%c0_7, %c0_8] : memref<16x128xf32, #tpu.memory_space<vmem>>, vector<16x128xf32>
    tpu.vector_store %arg5[%c0_7, %c0_8], %10 {strides = array<i32>} : memref<16x128xf32, #tpu.memory_space<vmem>>, vector<16x128xf32>,
    return
  }
  func.func @transform_0(%arg0: i32, %arg1: i32) -> (i32, i32) {
    %c0_i32 = arith.constant 0 : i32
    %c0_i32_0 = arith.constant 0 : i32
    return %arg0, %c0_i32 : i32, i32
  }
  func.func @transform_1(%arg0: i32, %arg1: i32) -> (i32, i32) {
    %c0_i32 = arith.constant 0 : i32
    %c0_i32_0 = arith.constant 0 : i32
    return %c0_i32, %arg1 : i32, i32
  }
  func.func @transform_2(%arg0: i32, %arg1: i32) -> (i32, i32) {
    %c0_i32 = arith.constant 0 : i32
    %c0_i32_0 = arith.constant 0 : i32
    return %c0_i32, %arg1 : i32, i32
  }
  func.func @transform_3(%arg0: i32, %arg1: i32) -> (i32, i32) {
    %c0_i32 = arith.constant 0 : i32
    return %arg0, %arg1 : i32, i32
  }
}

module attributes {stable_mosaic.version = 11 : i64} {
  func.func @_fused_matmul_kernel(%arg0: i32, %arg1: i32, %arg2: memref<16x640xbf16, #tpu.memory_space<vmem>>, %arg3: memref<640x128xbf16, #tpu.memory_space<vmem>>, %arg4: memref<1x128xf32, #tpu.memory_space<vmem>>, %arg5: memref<16x128xf32, #tpu.memory_space<vmem>>) attributes {dimension_semantics = [#tpu.dimension_semantics<parallel>, #tpu.dimension_semantics<parallel>], iteration_bounds = array<i64: 1, 1>, scalar_prefetch = 0 : i64, scratch_operands = 0 : i64, tpu.core_type = #tpu.core_type<tc>, window_params = [{transform_indices = @transform_0, window_bounds = array<i64: 16, 640>}, {transform_indices = @transform_1, window_bounds = array<i64: 640, 128>}, {transform_indices = @transform_2, window_bounds = array<i64: 1, 128>}, {transform_indices = @transform_3, window_bounds = array<i64: 16, 128>}]} {
    %c0 = arith.constant 0 : index
    %c0_0 = arith.constant 0 : index
    %0 = vector.load %arg2[%c0, %c0_0] : memref<16x640xbf16, #tpu.memory_space<vmem>>, vector<16x640xbf16>
    %c0_1 = arith.constant 0 : index
    %c0_2 = arith.constant 0 : index
    %1 = vector.load %arg3[%c0_1, %c0_2] : memref<640x128xbf16, #tpu.memory_space<vmem>>, vector<640x128xbf16>
    %cst = arith.constant dense<0.000000e+00> : vector<16x128xf32>
    %2 = tpu.matmul %0, %1, %cst {dimension_numbers = #tpu.dot_dimension_numbers<[1], [0], [0], [1], [0, 0, 1, 1], [], []>} : vector<16x640xbf16>, vector<640x128xbf16>, vector<16x128xf32> -> vector<16x128xf32>
    %c0_3 = arith.constant 0 : index
    %c0_4 = arith.constant 0 : index
    %3 = vector.load %arg4[%c0_3, %c0_4] : memref<1x128xf32, #tpu.memory_space<vmem>>, vector<1x128xf32>
    %4 = vector.broadcast %3 : vector<1x128xf32> to vector<16x128xf32>
    %5 = arith.addf %2, %4 : vector<16x128xf32>
    %cst_5 = arith.constant 0.000000e+00 : f32
    %6 = vector.broadcast %cst_5 : f32 to vector<16x128xf32>
    %7 = arith.cmpf ogt, %5, %6 : vector<16x128xf32>
    %cst_6 = arith.constant 2.000000e-01 : f32
    %8 = vector.broadcast %cst_6 : f32 to vector<16x128xf32>
    %9 = arith.mulf %8, %5 : vector<16x128xf32>
    %10 = arith.select %7, %5, %9 : vector<16x128xi1>, vector<16x128xf32>
    %c0_7 = arith.constant 0 : index
    %c0_8 = arith.constant 0 : index
    %11 = vector.load %arg5[%c0_7, %c0_8] : memref<16x128xf32, #tpu.memory_space<vmem>>, vector<16x128xf32>
    tpu.vector_store %arg5[%c0_7, %c0_8], %10 {strides = array<i32>} : memref<16x128xf32, #tpu.memory_space<vmem>>, vector<16x128xf32>,
    return
  }
  func.func @transform_0(%arg0: i32, %arg1: i32) -> (i32, i32) {
    %c0_i32 = arith.constant 0 : i32
    %c0_i32_0 = arith.constant 0 : i32
    return %arg0, %c0_i32 : i32, i32
  }
  func.func @transform_1(%arg0: i32, %arg1: i32) -> (i32, i32) {
    %c0_i32 = arith.constant 0 : i32
    %c0_i32_0 = arith.constant 0 : i32
    return %c0_i32, %arg1 : i32, i32
  }
  func.func @transform_2(%arg0: i32, %arg1: i32) -> (i32, i32) {
    %c0_i32 = arith.constant 0 : i32
    %c0_i32_0 = arith.constant 0 : i32
    return %c0_i32, %arg1 : i32, i32
  }
  func.func @transform_3(%arg0: i32, %arg1: i32) -> (i32, i32) {
    %c0_i32 = arith.constant 0 : i32
    return %arg0, %arg1 : i32, i32
  }
}

module attributes {stable_mosaic.version = 11 : i64} {
  func.func @_fused_matmul_kernel(%arg0: i32, %arg1: i32, %arg2: memref<32x384xbf16, #tpu.memory_space<vmem>>, %arg3: memref<384x128xbf16, #tpu.memory_space<vmem>>, %arg4: memref<1x128xf32, #tpu.memory_space<vmem>>, %arg5: memref<32x128xf32, #tpu.memory_space<vmem>>) attributes {dimension_semantics = [#tpu.dimension_semantics<parallel>, #tpu.dimension_semantics<parallel>], iteration_bounds = array<i64: 1, 1>, scalar_prefetch = 0 : i64, scratch_operands = 0 : i64, tpu.core_type = #tpu.core_type<tc>, window_params = [{transform_indices = @transform_0, window_bounds = array<i64: 32, 384>}, {transform_indices = @transform_1, window_bounds = array<i64: 384, 128>}, {transform_indices = @transform_2, window_bounds = array<i64: 1, 128>}, {transform_indices = @transform_3, window_bounds = array<i64: 32, 128>}]} {
    %c0 = arith.constant 0 : index
    %c0_0 = arith.constant 0 : index
    %0 = vector.load %arg2[%c0, %c0_0] : memref<32x384xbf16, #tpu.memory_space<vmem>>, vector<32x384xbf16>
    %c0_1 = arith.constant 0 : index
    %c0_2 = arith.constant 0 : index
    %1 = vector.load %arg3[%c0_1, %c0_2] : memref<384x128xbf16, #tpu.memory_space<vmem>>, vector<384x128xbf16>
    %cst = arith.constant dense<0.000000e+00> : vector<32x128xf32>
    %2 = tpu.matmul %0, %1, %cst {dimension_numbers = #tpu.dot_dimension_numbers<[1], [0], [0], [1], [0, 0, 1, 1], [], []>} : vector<32x384xbf16>, vector<384x128xbf16>, vector<32x128xf32> -> vector<32x128xf32>
    %c0_3 = arith.constant 0 : index
    %c0_4 = arith.constant 0 : index
    %3 = vector.load %arg4[%c0_3, %c0_4] : memref<1x128xf32, #tpu.memory_space<vmem>>, vector<1x128xf32>
    %4 = vector.broadcast %3 : vector<1x128xf32> to vector<32x128xf32>
    %5 = arith.addf %2, %4 : vector<32x128xf32>
    %cst_5 = arith.constant 0.000000e+00 : f32
    %6 = vector.broadcast %cst_5 : f32 to vector<32x128xf32>
    %7 = arith.cmpf ogt, %5, %6 : vector<32x128xf32>
    %cst_6 = arith.constant 2.000000e-01 : f32
    %8 = vector.broadcast %cst_6 : f32 to vector<32x128xf32>
    %9 = arith.mulf %8, %5 : vector<32x128xf32>
    %10 = arith.select %7, %5, %9 : vector<32x128xi1>, vector<32x128xf32>
    %c0_7 = arith.constant 0 : index
    %c0_8 = arith.constant 0 : index
    %11 = vector.load %arg5[%c0_7, %c0_8] : memref<32x128xf32, #tpu.memory_space<vmem>>, vector<32x128xf32>
    tpu.vector_store %arg5[%c0_7, %c0_8], %10 {strides = array<i32>} : memref<32x128xf32, #tpu.memory_space<vmem>>, vector<32x128xf32>,
    return
  }
  func.func @transform_0(%arg0: i32, %arg1: i32) -> (i32, i32) {
    %c0_i32 = arith.constant 0 : i32
    %c0_i32_0 = arith.constant 0 : i32
    return %arg0, %c0_i32 : i32, i32
  }
  func.func @transform_1(%arg0: i32, %arg1: i32) -> (i32, i32) {
    %c0_i32 = arith.constant 0 : i32
    %c0_i32_0 = arith.constant 0 : i32
    return %c0_i32, %arg1 : i32, i32
  }
  func.func @transform_2(%arg0: i32, %arg1: i32) -> (i32, i32) {
    %c0_i32 = arith.constant 0 : i32
    %c0_i32_0 = arith.constant 0 : i32
    return %c0_i32, %arg1 : i32, i32
  }
  func.func @transform_3(%arg0: i32, %arg1: i32) -> (i32, i32) {
    %c0_i32 = arith.constant 0 : i32
    return %arg0, %arg1 : i32, i32
  }
}

module attributes {stable_mosaic.version = 11 : i64} {
  func.func @_fused_matmul_kernel(%arg0: i32, %arg1: i32, %arg2: memref<128x256xbf16, #tpu.memory_space<vmem>>, %arg3: memref<256x128xbf16, #tpu.memory_space<vmem>>, %arg4: memref<1x128xf32, #tpu.memory_space<vmem>>, %arg5: memref<128x128xf32, #tpu.memory_space<vmem>>) attributes {dimension_semantics = [#tpu.dimension_semantics<parallel>, #tpu.dimension_semantics<parallel>], iteration_bounds = array<i64: 1, 1>, scalar_prefetch = 0 : i64, scratch_operands = 0 : i64, tpu.core_type = #tpu.core_type<tc>, window_params = [{transform_indices = @transform_0, window_bounds = array<i64: 128, 256>}, {transform_indices = @transform_1, window_bounds = array<i64: 256, 128>}, {transform_indices = @transform_2, window_bounds = array<i64: 1, 128>}, {transform_indices = @transform_3, window_bounds = array<i64: 128, 128>}]} {
    %c0 = arith.constant 0 : index
    %c0_0 = arith.constant 0 : index
    %0 = vector.load %arg2[%c0, %c0_0] : memref<128x256xbf16, #tpu.memory_space<vmem>>, vector<128x256xbf16>
    %c0_1 = arith.constant 0 : index
    %c0_2 = arith.constant 0 : index
    %1 = vector.load %arg3[%c0_1, %c0_2] : memref<256x128xbf16, #tpu.memory_space<vmem>>, vector<256x128xbf16>
    %cst = arith.constant dense<0.000000e+00> : vector<128x128xf32>
    %2 = tpu.matmul %0, %1, %cst {dimension_numbers = #tpu.dot_dimension_numbers<[1], [0], [0], [1], [0, 0, 1, 1], [], []>} : vector<128x256xbf16>, vector<256x128xbf16>, vector<128x128xf32> -> vector<128x128xf32>
    %c0_3 = arith.constant 0 : index
    %c0_4 = arith.constant 0 : index
    %3 = vector.load %arg4[%c0_3, %c0_4] : memref<1x128xf32, #tpu.memory_space<vmem>>, vector<1x128xf32>
    %4 = vector.broadcast %3 : vector<1x128xf32> to vector<128x128xf32>
    %5 = arith.addf %2, %4 : vector<128x128xf32>
    %cst_5 = arith.constant 0.000000e+00 : f32
    %6 = vector.broadcast %cst_5 : f32 to vector<128x128xf32>
    %7 = arith.cmpf ogt, %5, %6 : vector<128x128xf32>
    %cst_6 = arith.constant 2.000000e-01 : f32
    %8 = vector.broadcast %cst_6 : f32 to vector<128x128xf32>
    %9 = arith.mulf %8, %5 : vector<128x128xf32>
    %10 = arith.select %7, %5, %9 : vector<128x128xi1>, vector<128x128xf32>
    %c0_7 = arith.constant 0 : index
    %c0_8 = arith.constant 0 : index
    %11 = vector.load %arg5[%c0_7, %c0_8] : memref<128x128xf32, #tpu.memory_space<vmem>>, vector<128x128xf32>
    tpu.vector_store %arg5[%c0_7, %c0_8], %10 {strides = array<i32>} : memref<128x128xf32, #tpu.memory_space<vmem>>, vector<128x128xf32>,
    return
  }
  func.func @transform_0(%arg0: i32, %arg1: i32) -> (i32, i32) {
    %c0_i32 = arith.constant 0 : i32
    %c0_i32_0 = arith.constant 0 : i32
    return %arg0, %c0_i32 : i32, i32
  }
  func.func @transform_1(%arg0: i32, %arg1: i32) -> (i32, i32) {
    %c0_i32 = arith.constant 0 : i32
    %c0_i32_0 = arith.constant 0 : i32
    return %c0_i32, %arg1 : i32, i32
  }
  func.func @transform_2(%arg0: i32, %arg1: i32) -> (i32, i32) {
    %c0_i32 = arith.constant 0 : i32
    %c0_i32_0 = arith.constant 0 : i32
    return %c0_i32, %arg1 : i32, i32
  }
  func.func @transform_3(%arg0: i32, %arg1: i32) -> (i32, i32) {
    %c0_i32 = arith.constant 0 : i32
    return %arg0, %arg1 : i32, i32
  }
}

module attributes {stable_mosaic.version = 11 : i64} {
  func.func @_fused_matmul_kernel(%arg0: i32, %arg1: i32, %arg2: memref<256x128xbf16, #tpu.memory_space<vmem>>, %arg3: memref<128x128xbf16, #tpu.memory_space<vmem>>, %arg4: memref<1x128xf32, #tpu.memory_space<vmem>>, %arg5: memref<256x128xf32, #tpu.memory_space<vmem>>) attributes {dimension_semantics = [#tpu.dimension_semantics<parallel>, #tpu.dimension_semantics<parallel>], iteration_bounds = array<i64: 2, 1>, scalar_prefetch = 0 : i64, scratch_operands = 0 : i64, tpu.core_type = #tpu.core_type<tc>, window_params = [{transform_indices = @transform_0, window_bounds = array<i64: 256, 128>}, {transform_indices = @transform_1, window_bounds = array<i64: 128, 128>}, {transform_indices = @transform_2, window_bounds = array<i64: 1, 128>}, {transform_indices = @transform_3, window_bounds = array<i64: 256, 128>}]} {
    %c0 = arith.constant 0 : index
    %c0_0 = arith.constant 0 : index
    %0 = vector.load %arg2[%c0, %c0_0] : memref<256x128xbf16, #tpu.memory_space<vmem>>, vector<256x128xbf16>
    %c0_1 = arith.constant 0 : index
    %c0_2 = arith.constant 0 : index
    %1 = vector.load %arg3[%c0_1, %c0_2] : memref<128x128xbf16, #tpu.memory_space<vmem>>, vector<128x128xbf16>
    %cst = arith.constant dense<0.000000e+00> : vector<256x128xf32>
    %2 = tpu.matmul %0, %1, %cst {dimension_numbers = #tpu.dot_dimension_numbers<[1], [0], [0], [1], [0, 0, 1, 1], [], []>} : vector<256x128xbf16>, vector<128x128xbf16>, vector<256x128xf32> -> vector<256x128xf32>
    %c0_3 = arith.constant 0 : index
    %c0_4 = arith.constant 0 : index
    %3 = vector.load %arg4[%c0_3, %c0_4] : memref<1x128xf32, #tpu.memory_space<vmem>>, vector<1x128xf32>
    %4 = vector.broadcast %3 : vector<1x128xf32> to vector<256x128xf32>
    %5 = arith.addf %2, %4 : vector<256x128xf32>
    %6 = math.tanh %5 : vector<256x128xf32>
    %c0_5 = arith.constant 0 : index
    %c0_6 = arith.constant 0 : index
    %7 = vector.load %arg5[%c0_5, %c0_6] : memref<256x128xf32, #tpu.memory_space<vmem>>, vector<256x128xf32>
    tpu.vector_store %arg5[%c0_5, %c0_6], %6 {strides = array<i32>} : memref<256x128xf32, #tpu.memory_space<vmem>>, vector<256x128xf32>,
    return
  }
  func.func @transform_0(%arg0: i32, %arg1: i32) -> (i32, i32) {
    %c0_i32 = arith.constant 0 : i32
    %c0_i32_0 = arith.constant 0 : i32
    return %arg0, %c0_i32 : i32, i32
  }
  func.func @transform_1(%arg0: i32, %arg1: i32) -> (i32, i32) {
    %c0_i32 = arith.constant 0 : i32
    %c0_i32_0 = arith.constant 0 : i32
    return %c0_i32, %arg1 : i32, i32
  }
  func.func @transform_2(%arg0: i32, %arg1: i32) -> (i32, i32) {
    %c0_i32 = arith.constant 0 : i32
    %c0_i32_0 = arith.constant 0 : i32
    return %c0_i32, %arg1 : i32, i32
  }
  func.func @transform_3(%arg0: i32, %arg1: i32) -> (i32, i32) {
    %c0_i32 = arith.constant 0 : i32
    return %arg0, %arg1 : i32, i32
  }
}

</mosaic_0001>

<bundles_post_ra>
// kernel: autoencoder_conv_forward.10
= control target key start
LH: loop header
LB: loop body
LE: loop exit
PB: predicated region body
PF: predicated region fallthrough
CT: control target
= control target key end

     0   :  { %s970_s12 = smov 0   ;;  %s972_s13 = smov 0   ;;  %s1120_s0 = inlined_call_operand.vmem [shape: bf16[512,128], index: 0, kind: input, shape index: {}]   ;;  %s1121_s1 = inlined_call_operand.vmem [shape: bf16[128,128], index: 1, kind: input, shape index: {}]   ;;  %s1122_s2 = inlined_call_operand.vmem [shape: f32[1,128], index: 2, kind: input, shape index: {}]   ;;  %s1123_s3 = inlined_call_operand.vmem [shape: f32[512,128], index: 3, kind: output, shape index: {}]  }
   0x1   :  { %s974_s14 = smov 0  }
   0x2 LB: > { %s25_s15 = sadd.s32 1, %s944_s13  ;;  %p758_p0 = scmp.ge.s32.totalorder %s948_s14, 1  ;;  %s948_s14 = sphi %s974_s14, %s13_s14   ;;  %s944_s13 = sphi %s972_s13, %s1125_s13   ;;  %s940_s12 = sphi %s970_s12, %s1124_s12  }
   0x3   : > { %p27_p1 = scmp.ge.s32.totalorder %s25_s15, 2  ;;  %p169_p2 = scmp.lt.s32.totalorder %s948_s14, 3 }
   0x5   : > { %s1127_s15 = smov (%p27_p1, %s25_s15), 0  ;;  %p170_p3 = pnand %p758_p0, %p169_p2 }
   0x6   : > { %s759_s18 = sshll.u32 (!%p170_p3), %s940_s12, 5 }
   0x7   : > { %173 = sbr.rel (%p170_p3) target bundleno = 273 (0x111), region = 32  ;;  %p204_p4 = scmp.lt.s32.totalorder (!%p170_p3), %s759_s18, 63 }
   0xc   : > { %v902_v0 = vld [vmem:[%s1121_s1 + $0x38] sm:$0xff]   ;;  %v903_v1 = vld [vmem:[%s1121_s1 + $0x30] sm:$0xff]   ;;  %s1129_s18 = smov (!%p204_p4, %s759_s18), 63  ;;  %v904_v2 = vld [vmem:[%s1121_s1 + $0x28] sm:$0xff]  }
   0xd   : > { %814 = vmatprep.subr.bf16.mxu0 %v902_v0  ;;  %862 = vmatprep.subr.bf16.mxu1 %v902_v0  ;;  %s760_s23 = sshll.u32 %s1129_s18, 2  ;;  %v905_v3 = vld [vmem:[%s1121_s1 + $0x20] sm:$0xff]   ;;  %v906_v6 = vld [vmem:[%s1121_s1 + $0x18] sm:$0xff]   ;;  %v907_v7 = vld [vmem:[%s1121_s1 + $0x10] sm:$0xff]   ;;  %s762_s12 = sshll.u32 %s1129_s18, 3 }
   0xe   : > { %815 = vmatpush3.bf16.msra.mxu0 %v902_v0  ;;  %870 = vmatpush3.bf16.msra.mxu1 %v902_v0  ;;  %s1003_s26 = scalar_lea.vmem %s1120_s0, %s760_s23  ;;  %v908_v8 = vld [vmem:[%s1121_s1 + $0x8] sm:$0xff]   ;;  %v909_v9 = vld [vmem:[%s1121_s1] sm:$0xff]   ;;  %s1047_s19 = scalar_lea.vmem %s1123_s3, %s762_s12 }
   0xf   : > { %816 = vmatprep.subr.bf16.mxu0 %v903_v1  ;;  %863 = vmatprep.subr.bf16.mxu1 %v903_v1  ;;  %v910_v4 = vld [vmem:[%s1003_s26] sm:$0xff]   ;;  %v912_v10 = vld [vmem:[%s1003_s26 + $0x8] sm:$0xff]   ;;  %v914_v12 = vld [vmem:[%s1003_s26 + $0x10] sm:$0xff]  }
  0x10   : > { %v911_v5 = vld [vmem:[%s1003_s26 + $0x40] sm:$0xff]   ;;  %830 = vmatprep.mubr.bf16.mxu0 %v910_v4  ;;  %v913_v11 = vld [vmem:[%s1003_s26 + $0x48] sm:$0xff]   ;;  %v915_v13 = vld [vmem:[%s1003_s26 + $0x50] sm:$0xff]  }
  0x11   : > { %846 = vmatprep.mubr.bf16.mxu1 %v911_v5  ;;  %v916_v14 = vld [vmem:[%s1003_s26 + $0x18] sm:$0xff]   ;;  %v918_v16 = vld [vmem:[%s1003_s26 + $0x20] sm:$0xff]   ;;  %v920_v18 = vld [vmem:[%s1003_s26 + $0x28] sm:$0xff]  }
  0x12   : > { %817 = vmatpush3.bf16.msra.mxu0 %v903_v1  ;;  %871 = vmatpush3.bf16.msra.mxu1 %v903_v1  ;;  %v917_v15 = vld [vmem:[%s1003_s26 + $0x58] sm:$0xff]   ;;  %v919_v17 = vld [vmem:[%s1003_s26 + $0x60] sm:$0xff]   ;;  %v921_v19 = vld [vmem:[%s1003_s26 + $0x68] sm:$0xff]  }
  0x13   : > { %818 = vmatprep.subr.bf16.mxu0 %v904_v2  ;;  %864 = vmatprep.subr.bf16.mxu1 %v904_v2  ;;  %v922_v20 = vld [vmem:[%s1003_s26 + $0x30] sm:$0xff]   ;;  %v924_v22 = vld [vmem:[%s1003_s26 + $0x38] sm:$0xff]   ;;  %v1039_v24 = vld [vmem:[%s1122_s2] ss:$0 sm:$0xff] }
  0x14   : > { %v923_v21 = vld [vmem:[%s1003_s26 + $0x70] sm:$0xff]   ;;  %v925_v23 = vld [vmem:[%s1003_s26 + $0x78] sm:$0xff]  }
  0x16   : > { %819 = vmatpush3.bf16.msra.mxu0 %v904_v2  ;;  %872 = vmatpush3.bf16.msra.mxu1 %v904_v2 }
  0x17   : > { %820 = vmatprep.subr.bf16.mxu0 %v905_v3  ;;  %865 = vmatprep.subr.bf16.mxu1 %v905_v3 }
  0x1a   : > { %821 = vmatpush3.bf16.msra.mxu0 %v905_v3  ;;  %873 = vmatpush3.bf16.msra.mxu1 %v905_v3 }
  0x1b   : > { %822 = vmatprep.subr.bf16.mxu0 %v906_v6  ;;  %866 = vmatprep.subr.bf16.mxu1 %v906_v6 }
  0x1e   : > { %823 = vmatpush3.bf16.msra.mxu0 %v906_v6  ;;  %874 = vmatpush3.bf16.msra.mxu1 %v906_v6 }
  0x1f   : > { %824 = vmatprep.subr.bf16.mxu0 %v907_v7  ;;  %867 = vmatprep.subr.bf16.mxu1 %v907_v7 }
  0x22   : > { %825 = vmatpush3.bf16.msra.mxu0 %v907_v7  ;;  %875 = vmatpush3.bf16.msra.mxu1 %v907_v7 }
  0x23   : > { %826 = vmatprep.subr.bf16.mxu0 %v908_v8  ;;  %868 = vmatprep.subr.bf16.mxu1 %v908_v8 }
  0x26   : > { %827 = vmatpush3.bf16.msra.mxu0 %v908_v8  ;;  %876 = vmatpush3.bf16.msra.mxu1 %v908_v8 }
  0x27   : > { %828 = vmatprep.subr.bf16.mxu0 %v909_v9  ;;  %869 = vmatprep.subr.bf16.mxu1 %v909_v9 }
  0x2a   : > { %829 = vmatpush3.bf16.msra.mxu0 %v909_v9  ;;  %877 = vmatpush3.bf16.msra.mxu1 %v909_v9 }
  0x2d   : > { %831 = vmatmul.mubr.bf16.vlgmr.msra.gmra.mxu0 %v912_v10  ;;  %847 = vmatmul.mubr.bf16.vlgmr.msra.gmra.mxu1 %v913_v11 }
  0x2e   : > { %834 = vmatprep.mubr.bf16.mxu0 %v914_v12  ;;  %850 = vmatprep.mubr.bf16.mxu1 %v915_v13 }
  0x35   : > { %835 = vmatmul.mubr.bf16.gmra.mxu0 %v916_v14  ;;  %851 = vmatmul.mubr.bf16.gmra.mxu1 %v917_v15 }
  0x36   : > { %838 = vmatprep.mubr.bf16.mxu0 %v918_v16  ;;  %854 = vmatprep.mubr.bf16.mxu1 %v919_v17 }
  0x3d   : > { %839 = vmatmul.mubr.bf16.gmra.mxu0 %v920_v18  ;;  %855 = vmatmul.mubr.bf16.gmra.mxu1 %v921_v19 }
  0x3e   : > { %842 = vmatprep.mubr.bf16.mxu0 %v922_v20  ;;  %858 = vmatprep.mubr.bf16.mxu1 %v923_v21 }
  0x45   : > { %843 = vmatmul.mubr.bf16.gmra.mxu0 %v924_v22  ;;  %859 = vmatmul.mubr.bf16.gmra.mxu1 %v925_v23 }
  0xed   : > { %v832_v25 = vpop.f32.mrf.mxu0  ;;  %v848_v26 = vpop.f32.mrf.mxu1 }
  0xee   : > { %v468_v27 = vadd.f32 %v832_v25, %v1039_v24  ;;  %v532_v28 = vadd.f32 %v848_v26, %v1039_v24 }
  0xef   : > { %v459_v29 = vpop.f32.mrf.mxu0  ;;  %v523_v30 = vpop.f32.mrf.mxu1 }
  0xf0   : > { %v588_v31 = vmax.f32 %v468_v27, 0.0  ;;  %v604_v32 = vmax.f32 %v532_v28, 0.0  ;;  %v460_v33 = vadd.f32 %v1039_v24, %v459_v29  ;;  %v524_v34 = vadd.f32 %v1039_v24, %v523_v30 }
  0xf1   : > { %v833_v35 = vpop.f32.mrf.mxu0  ;;  %v849_v36 = vpop.f32.mrf.mxu1 }
  0xf2   : > { %620 = vst [vmem:[%s1047_s19 + $0x10] sm:$0xff] %v588_v31  ;;  %636 = vst [vmem:[%s1047_s19 + $0x90] sm:$0xff] %v604_v32  ;;  %v586_v37 = vmax.f32 %v460_v33, 0.0  ;;  %v602_v38 = vmax.f32 %v524_v34, 0.0  ;;  %v471_v39 = vadd.f32 %v833_v35, %v1039_v24  ;;  %v535_v40 = vadd.f32 %v849_v36, %v1039_v24 }
  0xf3   : > { %v462_v41 = vpop.f32.mrf.mxu0  ;;  %v526_v42 = vpop.f32.mrf.mxu1 }
  0xf4   : > { %618 = vst [vmem:[%s1047_s19] sm:$0xff] %v586_v37  ;;  %634 = vst [vmem:[%s1047_s19 + $0x80] sm:$0xff] %v602_v38  ;;  %v589_v43 = vmax.f32 %v471_v39, 0.0  ;;  %v605_v44 = vmax.f32 %v535_v40, 0.0  ;;  %v463_v45 = vadd.f32 %v1039_v24, %v462_v41  ;;  %v527_v46 = vadd.f32 %v1039_v24, %v526_v42 }
  0xf5   : > { %v836_v47 = vpop.f32.mrf.mxu0  ;;  %v852_v48 = vpop.f32.mrf.mxu1 }
  0xf6   : > { %621 = vst [vmem:[%s1047_s19 + $0x18] sm:$0xff] %v589_v43  ;;  %637 = vst [vmem:[%s1047_s19 + $0x98] sm:$0xff] %v605_v44  ;;  %v587_v49 = vmax.f32 %v463_v45, 0.0  ;;  %v603_v50 = vmax.f32 %v527_v46, 0.0  ;;  %v484_v51 = vadd.f32 %v836_v47, %v1039_v24  ;;  %v548_v52 = vadd.f32 %v852_v48, %v1039_v24 }
  0xf7   : > { %v475_v53 = vpop.f32.mrf.mxu0  ;;  %v539_v54 = vpop.f32.mrf.mxu1 }
  0xf8   : > { %619 = vst [vmem:[%s1047_s19 + $0x8] sm:$0xff] %v587_v49  ;;  %635 = vst [vmem:[%s1047_s19 + $0x88] sm:$0xff] %v603_v50  ;;  %v592_v55 = vmax.f32 %v484_v51, 0.0  ;;  %v608_v56 = vmax.f32 %v548_v52, 0.0  ;;  %v476_v57 = vadd.f32 %v1039_v24, %v475_v53  ;;  %v540_v58 = vadd.f32 %v1039_v24, %v539_v54 }
  0xf9   : > { %v837_v59 = vpop.f32.mrf.mxu0  ;;  %v853_v60 = vpop.f32.mrf.mxu1 }
  0xfa   : > { %624 = vst [vmem:[%s1047_s19 + $0x30] sm:$0xff] %v592_v55  ;;  %640 = vst [vmem:[%s1047_s19 + $0xb0] sm:$0xff] %v608_v56  ;;  %v590_v61 = vmax.f32 %v476_v57, 0.0  ;;  %v606_v62 = vmax.f32 %v540_v58, 0.0  ;;  %v487_v63 = vadd.f32 %v837_v59, %v1039_v24  ;;  %v551_v0 = vadd.f32 %v853_v60, %v1039_v24 }
  0xfb   : > { %v478_v1 = vpop.f32.mrf.mxu0  ;;  %v542_v2 = vpop.f32.mrf.mxu1 }
  0xfc   : > { %622 = vst [vmem:[%s1047_s19 + $0x20] sm:$0xff] %v590_v61  ;;  %638 = vst [vmem:[%s1047_s19 + $0xa0] sm:$0xff] %v606_v62  ;;  %v593_v3 = vmax.f32 %v487_v63, 0.0  ;;  %v609_v4 = vmax.f32 %v551_v0, 0.0  ;;  %v479_v5 = vadd.f32 %v1039_v24, %v478_v1  ;;  %v543_v6 = vadd.f32 %v1039_v24, %v542_v2 }
  0xfd   : > { %v840_v7 = vpop.f32.mrf.mxu0  ;;  %v856_v8 = vpop.f32.mrf.mxu1 }
  0xfe   : > { %625 = vst [vmem:[%s1047_s19 + $0x38] sm:$0xff] %v593_v3  ;;  %641 = vst [vmem:[%s1047_s19 + $0xb8] sm:$0xff] %v609_v4  ;;  %v591_v9 = vmax.f32 %v479_v5, 0.0  ;;  %v607_v10 = vmax.f32 %v543_v6, 0.0  ;;  %v500_v11 = vadd.f32 %v840_v7, %v1039_v24  ;;  %v564_v12 = vadd.f32 %v856_v8, %v1039_v24 }
  0xff   : > { %v491_v13 = vpop.f32.mrf.mxu0  ;;  %v555_v14 = vpop.f32.mrf.mxu1 }
 0x100   : > { %623 = vst [vmem:[%s1047_s19 + $0x28] sm:$0xff] %v591_v9  ;;  %639 = vst [vmem:[%s1047_s19 + $0xa8] sm:$0xff] %v607_v10  ;;  %v596_v15 = vmax.f32 %v500_v11, 0.0  ;;  %v612_v16 = vmax.f32 %v564_v12, 0.0  ;;  %v492_v17 = vadd.f32 %v1039_v24, %v491_v13  ;;  %v556_v18 = vadd.f32 %v1039_v24, %v555_v14 }
 0x101   : > { %v841_v19 = vpop.f32.mrf.mxu0  ;;  %v857_v20 = vpop.f32.mrf.mxu1 }
 0x102   : > { %628 = vst [vmem:[%s1047_s19 + $0x50] sm:$0xff] %v596_v15  ;;  %644 = vst [vmem:[%s1047_s19 + $0xd0] sm:$0xff] %v612_v16  ;;  %v594_v21 = vmax.f32 %v492_v17, 0.0  ;;  %v610_v22 = vmax.f32 %v556_v18, 0.0  ;;  %v503_v23 = vadd.f32 %v841_v19, %v1039_v24  ;;  %v567_v25 = vadd.f32 %v857_v20, %v1039_v24 }
 0x103   : > { %v494_v26 = vpop.f32.mrf.mxu0  ;;  %v558_v27 = vpop.f32.mrf.mxu1 }
 0x104   : > { %626 = vst [vmem:[%s1047_s19 + $0x40] sm:$0xff] %v594_v21  ;;  %642 = vst [vmem:[%s1047_s19 + $0xc0] sm:$0xff] %v610_v22  ;;  %v597_v28 = vmax.f32 %v503_v23, 0.0  ;;  %v613_v29 = vmax.f32 %v567_v25, 0.0  ;;  %v495_v30 = vadd.f32 %v1039_v24, %v494_v26  ;;  %v559_v31 = vadd.f32 %v1039_v24, %v558_v27 }
 0x105   : > { %v844_v32 = vpop.f32.mrf.mxu0  ;;  %v860_v33 = vpop.f32.mrf.mxu1 }
 0x106   : > { %629 = vst [vmem:[%s1047_s19 + $0x58] sm:$0xff] %v597_v28  ;;  %645 = vst [vmem:[%s1047_s19 + $0xd8] sm:$0xff] %v613_v29  ;;  %v595_v34 = vmax.f32 %v495_v30, 0.0  ;;  %v611_v35 = vmax.f32 %v559_v31, 0.0  ;;  %v516_v36 = vadd.f32 %v844_v32, %v1039_v24  ;;  %v580_v37 = vadd.f32 %v860_v33, %v1039_v24 }
 0x107   : > { %v507_v38 = vpop.f32.mrf.mxu0  ;;  %v571_v39 = vpop.f32.mrf.mxu1 }
 0x108   : > { %627 = vst [vmem:[%s1047_s19 + $0x48] sm:$0xff] %v595_v34  ;;  %643 = vst [vmem:[%s1047_s19 + $0xc8] sm:$0xff] %v611_v35  ;;  %v600_v40 = vmax.f32 %v516_v36, 0.0  ;;  %v616_v41 = vmax.f32 %v580_v37, 0.0  ;;  %v508_v42 = vadd.f32 %v1039_v24, %v507_v38  ;;  %v572_v43 = vadd.f32 %v1039_v24, %v571_v39 }
 0x109   : > { %v845_v44 = vpop.f32.mrf.mxu0  ;;  %v861_v45 = vpop.f32.mrf.mxu1 }
 0x10a   : > { %632 = vst [vmem:[%s1047_s19 + $0x70] sm:$0xff] %v600_v40  ;;  %648 = vst [vmem:[%s1047_s19 + $0xf0] sm:$0xff] %v616_v41  ;;  %v598_v46 = vmax.f32 %v508_v42, 0.0  ;;  %v614_v47 = vmax.f32 %v572_v43, 0.0  ;;  %v519_v48 = vadd.f32 %v845_v44, %v1039_v24  ;;  %v583_v49 = vadd.f32 %v861_v45, %v1039_v24 }
 0x10b   : > { %v510_v50 = vpop.f32.mrf.mxu0  ;;  %v574_v51 = vpop.f32.mrf.mxu1 }
 0x10c   : > { %630 = vst [vmem:[%s1047_s19 + $0x60] sm:$0xff] %v598_v46  ;;  %646 = vst [vmem:[%s1047_s19 + $0xe0] sm:$0xff] %v614_v47  ;;  %v601_v52 = vmax.f32 %v519_v48, 0.0  ;;  %v617_v53 = vmax.f32 %v583_v49, 0.0  ;;  %v511_v54 = vadd.f32 %v1039_v24, %v510_v50  ;;  %v575_v55 = vadd.f32 %v1039_v24, %v574_v51 }
 0x10e   : > { %633 = vst [vmem:[%s1047_s19 + $0x78] sm:$0xff] %v601_v52  ;;  %649 = vst [vmem:[%s1047_s19 + $0xf8] sm:$0xff] %v617_v53  ;;  %v599_v56 = vmax.f32 %v511_v54, 0.0  ;;  %v615_v57 = vmax.f32 %v575_v55, 0.0 }
 0x110   : > { %631 = vst [vmem:[%s1047_s19 + $0x68] sm:$0xff] %v599_v56  ;;  %647 = vst [vmem:[%s1047_s19 + $0xe8] sm:$0xff] %v615_v57 }
 0x111 PF: > { %s13_s14 = sadd.s32 1, %s948_s14   ;;  %s1124_s12 = smov %s944_s13 }
 0x112   : > { %p10_p5 = scmp.ge.s32.totalorder %s13_s14, 4   ;;  %s1125_s13 = smov %s1127_s15 }
 0x114   :  { %12 = sbr.rel (!%p10_p5) target bundleno = 2 (0x2), region = 68 }

// kernel: autoencoder_conv_forward.11
= control target key start
LH: loop header
LB: loop body
LE: loop exit
PB: predicated region body
PF: predicated region fallthrough
CT: control target
= control target key end

     0   :  { %s499_s1 = inlined_call_operand.vmem [shape: bf16[128,128], index: 1, kind: input, shape index: {}]   ;;  %s500_s0 = inlined_call_operand.vmem [shape: bf16[128,128], index: 0, kind: input, shape index: {}]   ;;  %s501_s2 = inlined_call_operand.vmem [shape: f32[1,128], index: 2, kind: input, shape index: {}]   ;;  %s502_s3 = inlined_call_operand.vmem [shape: f32[128,128], index: 3, kind: output, shape index: {}]  }
   0x1   :  { %v364_v0 = vld [vmem:[%s499_s1 + $0x38] sm:$0xff]   ;;  %v365_v1 = vld [vmem:[%s499_s1 + $0x30] sm:$0xff]   ;;  %v366_v2 = vld [vmem:[%s499_s1 + $0x28] sm:$0xff]  }
   0x2   :  { %316 = vmatprep.subr.bf16.mxu0 %v364_v0  ;;  %348 = vmatprep.subr.bf16.mxu1 %v364_v0  ;;  %v367_v3 = vld [vmem:[%s499_s1 + $0x20] sm:$0xff]   ;;  %v368_v6 = vld [vmem:[%s499_s1 + $0x18] sm:$0xff]   ;;  %v369_v7 = vld [vmem:[%s499_s1 + $0x10] sm:$0xff]  }
   0x3   :  { %317 = vmatpush3.bf16.msra.mxu0 %v364_v0  ;;  %356 = vmatpush3.bf16.msra.mxu1 %v364_v0  ;;  %v372_v4 = vld [vmem:[%s500_s0] sm:$0xff]   ;;  %v370_v8 = vld [vmem:[%s499_s1 + $0x8] sm:$0xff]   ;;  %v376_v12 = vld [vmem:[%s500_s0 + $0x10] sm:$0xff]  }
   0x4   :  { %318 = vmatprep.subr.bf16.mxu0 %v365_v1  ;;  %349 = vmatprep.subr.bf16.mxu1 %v365_v1  ;;  %v373_v5 = vld [vmem:[%s500_s0 + $0x20] sm:$0xff]   ;;  %v374_v10 = vld [vmem:[%s500_s0 + $0x8] sm:$0xff]   ;;  %v377_v13 = vld [vmem:[%s500_s0 + $0x30] sm:$0xff]  }
   0x5   :  { %332 = vmatprep.mubr.bf16.mxu0 %v372_v4  ;;  %340 = vmatprep.mubr.bf16.mxu1 %v373_v5  ;;  %v371_v9 = vld [vmem:[%s499_s1] sm:$0xff]   ;;  %v375_v11 = vld [vmem:[%s500_s0 + $0x28] sm:$0xff]   ;;  %v378_v14 = vld [vmem:[%s500_s0 + $0x18] sm:$0xff]  }
   0x6   :  { %v379_v15 = vld [vmem:[%s500_s0 + $0x38] sm:$0xff]   ;;  %v283_v16 = vld [vmem:[%s501_s2] ss:$0 sm:$0xff] }
   0x7   :  { %319 = vmatpush3.bf16.msra.mxu0 %v365_v1  ;;  %357 = vmatpush3.bf16.msra.mxu1 %v365_v1 }
   0x8   :  { %320 = vmatprep.subr.bf16.mxu0 %v366_v2  ;;  %350 = vmatprep.subr.bf16.mxu1 %v366_v2 }
   0xb   :  { %321 = vmatpush3.bf16.msra.mxu0 %v366_v2  ;;  %358 = vmatpush3.bf16.msra.mxu1 %v366_v2 }
   0xc   :  { %322 = vmatprep.subr.bf16.mxu0 %v367_v3  ;;  %351 = vmatprep.subr.bf16.mxu1 %v367_v3 }
   0xf   :  { %323 = vmatpush3.bf16.msra.mxu0 %v367_v3  ;;  %359 = vmatpush3.bf16.msra.mxu1 %v367_v3 }
  0x10   :  { %324 = vmatprep.subr.bf16.mxu0 %v368_v6  ;;  %352 = vmatprep.subr.bf16.mxu1 %v368_v6 }
  0x13   :  { %325 = vmatpush3.bf16.msra.mxu0 %v368_v6  ;;  %360 = vmatpush3.bf16.msra.mxu1 %v368_v6 }
  0x14   :  { %326 = vmatprep.subr.bf16.mxu0 %v369_v7  ;;  %353 = vmatprep.subr.bf16.mxu1 %v369_v7 }
  0x17   :  { %327 = vmatpush3.bf16.msra.mxu0 %v369_v7  ;;  %361 = vmatpush3.bf16.msra.mxu1 %v369_v7 }
  0x18   :  { %328 = vmatprep.subr.bf16.mxu0 %v370_v8  ;;  %354 = vmatprep.subr.bf16.mxu1 %v370_v8 }
  0x1b   :  { %329 = vmatpush3.bf16.msra.mxu0 %v370_v8  ;;  %362 = vmatpush3.bf16.msra.mxu1 %v370_v8 }
  0x1c   :  { %330 = vmatprep.subr.bf16.mxu0 %v371_v9  ;;  %355 = vmatprep.subr.bf16.mxu1 %v371_v9 }
  0x1f   :  { %331 = vmatpush3.bf16.msra.mxu0 %v371_v9  ;;  %363 = vmatpush3.bf16.msra.mxu1 %v371_v9 }
  0x22   :  { %333 = vmatmul.mubr.bf16.vlgmr.msra.gmra.mxu0 %v374_v10  ;;  %341 = vmatmul.mubr.bf16.vlgmr.msra.gmra.mxu1 %v375_v11 }
  0x23   :  { %336 = vmatprep.mubr.bf16.mxu0 %v376_v12  ;;  %344 = vmatprep.mubr.bf16.mxu1 %v377_v13 }
  0x2a   :  { %337 = vmatmul.mubr.bf16.gmra.mxu0 %v378_v14  ;;  %345 = vmatmul.mubr.bf16.gmra.mxu1 %v379_v15 }
  0xe2   :  { %v334_v17 = vpop.f32.mrf.mxu0  ;;  %v342_v18 = vpop.f32.mrf.mxu1 }
  0xe3   :  { %v193_v19 = vadd.f32 %v334_v17, %v283_v16  ;;  %v225_v20 = vadd.f32 %v342_v18, %v283_v16 }
  0xe4   :  { %v184_v21 = vpop.f32.mrf.mxu0  ;;  %v216_v22 = vpop.f32.mrf.mxu1 }
  0xe5   :  { %v249_v23 = vmax.f32 %v193_v19, 0.0  ;;  %v257_v24 = vmax.f32 %v225_v20, 0.0  ;;  %v185_v25 = vadd.f32 %v283_v16, %v184_v21  ;;  %v217_v26 = vadd.f32 %v283_v16, %v216_v22 }
  0xe6   :  { %v335_v27 = vpop.f32.mrf.mxu0  ;;  %v343_v28 = vpop.f32.mrf.mxu1 }
  0xe7   :  { %265 = vst [vmem:[%s502_s3 + $0x10] sm:$0xff] %v249_v23  ;;  %273 = vst [vmem:[%s502_s3 + $0x50] sm:$0xff] %v257_v24  ;;  %v247_v29 = vmax.f32 %v185_v25, 0.0  ;;  %v255_v30 = vmax.f32 %v217_v26, 0.0  ;;  %v196_v31 = vadd.f32 %v335_v27, %v283_v16  ;;  %v228_v32 = vadd.f32 %v343_v28, %v283_v16 }
  0xe8   :  { %v187_v33 = vpop.f32.mrf.mxu0  ;;  %v219_v34 = vpop.f32.mrf.mxu1 }
  0xe9   :  { %263 = vst [vmem:[%s502_s3] sm:$0xff] %v247_v29  ;;  %271 = vst [vmem:[%s502_s3 + $0x40] sm:$0xff] %v255_v30  ;;  %v250_v35 = vmax.f32 %v196_v31, 0.0  ;;  %v258_v36 = vmax.f32 %v228_v32, 0.0  ;;  %v188_v37 = vadd.f32 %v283_v16, %v187_v33  ;;  %v220_v38 = vadd.f32 %v283_v16, %v219_v34 }
  0xea   :  { %v338_v39 = vpop.f32.mrf.mxu0  ;;  %v346_v40 = vpop.f32.mrf.mxu1 }
  0xeb   :  { %266 = vst [vmem:[%s502_s3 + $0x18] sm:$0xff] %v250_v35  ;;  %274 = vst [vmem:[%s502_s3 + $0x58] sm:$0xff] %v258_v36  ;;  %v248_v41 = vmax.f32 %v188_v37, 0.0  ;;  %v256_v42 = vmax.f32 %v220_v38, 0.0  ;;  %v209_v43 = vadd.f32 %v338_v39, %v283_v16  ;;  %v241_v44 = vadd.f32 %v346_v40, %v283_v16 }
  0xec   :  { %v200_v45 = vpop.f32.mrf.mxu0  ;;  %v232_v46 = vpop.f32.mrf.mxu1 }
  0xed   :  { %264 = vst [vmem:[%s502_s3 + $0x8] sm:$0xff] %v248_v41  ;;  %272 = vst [vmem:[%s502_s3 + $0x48] sm:$0xff] %v256_v42  ;;  %v253_v47 = vmax.f32 %v209_v43, 0.0  ;;  %v261_v48 = vmax.f32 %v241_v44, 0.0  ;;  %v201_v49 = vadd.f32 %v283_v16, %v200_v45  ;;  %v233_v50 = vadd.f32 %v283_v16, %v232_v46 }
  0xee   :  { %v339_v51 = vpop.f32.mrf.mxu0  ;;  %v347_v52 = vpop.f32.mrf.mxu1 }
  0xef   :  { %269 = vst [vmem:[%s502_s3 + $0x30] sm:$0xff] %v253_v47  ;;  %277 = vst [vmem:[%s502_s3 + $0x70] sm:$0xff] %v261_v48  ;;  %v251_v53 = vmax.f32 %v201_v49, 0.0  ;;  %v259_v54 = vmax.f32 %v233_v50, 0.0  ;;  %v212_v55 = vadd.f32 %v339_v51, %v283_v16  ;;  %v244_v56 = vadd.f32 %v347_v52, %v283_v16 }
  0xf0   :  { %v203_v57 = vpop.f32.mrf.mxu0  ;;  %v235_v58 = vpop.f32.mrf.mxu1 }
  0xf1   :  { %267 = vst [vmem:[%s502_s3 + $0x20] sm:$0xff] %v251_v53  ;;  %275 = vst [vmem:[%s502_s3 + $0x60] sm:$0xff] %v259_v54  ;;  %v254_v59 = vmax.f32 %v212_v55, 0.0  ;;  %v262_v60 = vmax.f32 %v244_v56, 0.0  ;;  %v204_v61 = vadd.f32 %v283_v16, %v203_v57  ;;  %v236_v62 = vadd.f32 %v283_v16, %v235_v58 }
  0xf3   :  { %270 = vst [vmem:[%s502_s3 + $0x38] sm:$0xff] %v254_v59  ;;  %278 = vst [vmem:[%s502_s3 + $0x78] sm:$0xff] %v262_v60  ;;  %v252_v63 = vmax.f32 %v204_v61, 0.0  ;;  %v260_v0 = vmax.f32 %v236_v62, 0.0 }
  0xf5   :  { %268 = vst [vmem:[%s502_s3 + $0x28] sm:$0xff] %v252_v63  ;;  %276 = vst [vmem:[%s502_s3 + $0x68] sm:$0xff] %v260_v0 }

// kernel: autoencoder_conv_forward.12
= control target key start
LH: loop header
LB: loop body
LE: loop exit
PB: predicated region body
PF: predicated region fallthrough
CT: control target
= control target key end

     0   :  { %s417_s1 = inlined_call_operand.vmem [shape: bf16[256,128], index: 1, kind: input, shape index: {}]   ;;  %s418_s0 = inlined_call_operand.vmem [shape: bf16[32,256], index: 0, kind: input, shape index: {}]   ;;  %s419_s2 = inlined_call_operand.vmem [shape: f32[1,128], index: 2, kind: input, shape index: {}]   ;;  %s420_s3 = inlined_call_operand.vmem [shape: f32[32,128], index: 3, kind: output, shape index: {}]  }
   0x1   :  { %v300_v0 = vld [vmem:[%s417_s1 + $0x78] sm:$0xff]   ;;  %v302_v2 = vld [vmem:[%s417_s1 + $0x70] sm:$0xff]   ;;  %v304_v4 = vld [vmem:[%s417_s1 + $0x68] sm:$0xff]  }
   0x2   :  { %v301_v1 = vld [vmem:[%s417_s1 + $0x38] sm:$0xff]   ;;  %256 = vmatprep.subr.bf16.mxu0 %v300_v0  ;;  %284 = vmatprep.subr.bf16.mxu1 %v300_v0  ;;  %v303_v3 = vld [vmem:[%s417_s1 + $0x30] sm:$0xff]   ;;  %v305_v5 = vld [vmem:[%s417_s1 + $0x28] sm:$0xff]  }
   0x3   :  { %257 = vmatpush3.bf16.msra.mxu0 %v301_v1  ;;  %292 = vmatpush3.bf16.msra.mxu1 %v301_v1  ;;  %v306_v6 = vld [vmem:[%s417_s1 + $0x60] sm:$0xff]   ;;  %v308_v8 = vld [vmem:[%s417_s1 + $0x58] sm:$0xff]   ;;  %v310_v10 = vld [vmem:[%s417_s1 + $0x50] sm:$0xff]  }
   0x4   :  { %258 = vmatprep.subr.bf16.mxu0 %v302_v2  ;;  %285 = vmatprep.subr.bf16.mxu1 %v302_v2  ;;  %v307_v7 = vld [vmem:[%s417_s1 + $0x20] sm:$0xff]   ;;  %v309_v9 = vld [vmem:[%s417_s1 + $0x18] sm:$0xff]   ;;  %v311_v13 = vld [vmem:[%s417_s1 + $0x10] sm:$0xff]  }
   0x5   :  { %v318_v11 = vld [vmem:[%s418_s0 + $0x4] ss:$8 sps:$4 sm:$0xff]   ;;  %v321_v12 = vld [vmem:[%s418_s0 + $0x14] ss:$8 sps:$4 sm:$0xff]   ;;  %v316_v18 = vld [vmem:[%s418_s0] ss:$8 sps:$4 sm:$0xff]  }
   0x6   :  { %v312_v14 = vld [vmem:[%s417_s1 + $0x48] sm:$0xff]   ;;  %206 = vmatprep.mubr.bf16.mxu0 %v318_v11  ;;  %214 = vmatprep.mubr.bf16.mxu1 %v321_v12  ;;  %v314_v16 = vld [vmem:[%s417_s1 + $0x40] sm:$0xff]   ;;  %v319_v19 = vld [vmem:[%s418_s0 + $0x10] ss:$8 sps:$4 sm:$0xff]  }
   0x7   :  { %259 = vmatpush3.bf16.msra.mxu0 %v303_v3  ;;  %293 = vmatpush3.bf16.msra.mxu1 %v303_v3  ;;  %v313_v15 = vld [vmem:[%s417_s1 + $0x8] sm:$0xff]   ;;  %v315_v17 = vld [vmem:[%s417_s1] sm:$0xff]  }
   0x8   :  { %260 = vmatprep.subr.bf16.mxu0 %v304_v4  ;;  %286 = vmatprep.subr.bf16.mxu1 %v304_v4  ;;  %v235_v22 = vld [vmem:[%s419_s2] ss:$0 sm:$0xff] }
   0xb   :  { %261 = vmatpush3.bf16.msra.mxu0 %v305_v5  ;;  %294 = vmatpush3.bf16.msra.mxu1 %v305_v5 }
   0xc   :  { %262 = vmatprep.subr.bf16.mxu0 %v306_v6  ;;  %287 = vmatprep.subr.bf16.mxu1 %v306_v6 }
   0xf   :  { %263 = vmatpush3.bf16.msra.mxu0 %v307_v7  ;;  %295 = vmatpush3.bf16.msra.mxu1 %v307_v7 }
  0x10   :  { %264 = vmatprep.subr.bf16.mxu0 %v308_v8  ;;  %288 = vmatprep.subr.bf16.mxu1 %v308_v8 }
  0x13   :  { %265 = vmatpush3.bf16.msra.mxu0 %v309_v9  ;;  %296 = vmatpush3.bf16.msra.mxu1 %v309_v9 }
  0x14   :  { %266 = vmatprep.subr.bf16.mxu0 %v310_v10  ;;  %289 = vmatprep.subr.bf16.mxu1 %v310_v10 }
  0x17   :  { %267 = vmatpush3.bf16.msra.mxu0 %v311_v13  ;;  %297 = vmatpush3.bf16.msra.mxu1 %v311_v13 }
  0x18   :  { %268 = vmatprep.subr.bf16.mxu0 %v312_v14  ;;  %290 = vmatprep.subr.bf16.mxu1 %v312_v14 }
  0x1b   :  { %269 = vmatpush3.bf16.msra.mxu0 %v313_v15  ;;  %298 = vmatpush3.bf16.msra.mxu1 %v313_v15 }
  0x1c   :  { %270 = vmatprep.subr.bf16.mxu0 %v314_v16  ;;  %291 = vmatprep.subr.bf16.mxu1 %v314_v16 }
  0x1f   :  { %271 = vmatpush3.bf16.msra.mxu0 %v315_v17  ;;  %299 = vmatpush3.bf16.msra.mxu1 %v315_v17 }
  0x22   :  { %207 = vmatmul.mubr.bf16.vlgmr.msra.gmra.mxu0 %v316_v18  ;;  %215 = vmatmul.mubr.bf16.vlgmr.msra.gmra.mxu1 %v319_v19 }
  0xe2   :  { %v272_v20 = vpop.f32.mrf.mxu0  ;;  %v278_v21 = vpop.f32.mrf.mxu1 }
  0xe4   :  { %v273_v23 = vpop.f32.mrf.mxu0  ;;  %v279_v24 = vpop.f32.mrf.mxu1 }
  0xe5   :  { %v274_v25 = vadd.f32 %v273_v23, %v272_v20  ;;  %v280_v26 = vadd.f32 %v279_v24, %v278_v21 }
  0xe6   :  { %v275_v27 = vpop.f32.mrf.mxu0  ;;  %v281_v28 = vpop.f32.mrf.mxu1 }
  0xe7   :  { %v209_v29 = vadd.f32 %v274_v25, %v235_v22  ;;  %v217_v30 = vadd.f32 %v280_v26, %v235_v22 }
  0xe8   :  { %v276_v31 = vpop.f32.mrf.mxu0  ;;  %v282_v32 = vpop.f32.mrf.mxu1 }
  0xe9   :  { %v223_v33 = vmax.f32 %v209_v29, 0.0  ;;  %v225_v34 = vmax.f32 %v217_v30, 0.0  ;;  %v277_v35 = vadd.f32 %v276_v31, %v275_v27  ;;  %v283_v36 = vadd.f32 %v282_v32, %v281_v28 }
  0xeb   :  { %227 = vst [vmem:[%s420_s3] sm:$0xff] %v223_v33  ;;  %229 = vst [vmem:[%s420_s3 + $0x10] sm:$0xff] %v225_v34  ;;  %v212_v37 = vadd.f32 %v277_v35, %v235_v22  ;;  %v220_v38 = vadd.f32 %v283_v36, %v235_v22 }
  0xed   :  { %v224_v39 = vmax.f32 %v212_v37, 0.0  ;;  %v226_v40 = vmax.f32 %v220_v38, 0.0 }
  0xef   :  { %228 = vst [vmem:[%s420_s3 + $0x8] sm:$0xff] %v224_v39  ;;  %230 = vst [vmem:[%s420_s3 + $0x18] sm:$0xff] %v226_v40 }

// kernel: autoencoder_conv_forward.14
= control target key start
LH: loop header
LB: loop body
LE: loop exit
PB: predicated region body
PF: predicated region fallthrough
CT: control target
= control target key end

     0   :  { %s354_s1 = inlined_call_operand.vmem [shape: bf16[256,128], index: 1, kind: input, shape index: {}]   ;;  %s355_s0 = inlined_call_operand.vmem [shape: bf16[16,256], index: 0, kind: input, shape index: {}]   ;;  %s356_s2 = inlined_call_operand.vmem [shape: f32[1,128], index: 2, kind: input, shape index: {}]   ;;  %s357_s3 = inlined_call_operand.vmem [shape: f32[16,128], index: 3, kind: output, shape index: {}]  }
   0x1   :  { %v252_v0 = vld [vmem:[%s354_s1 + $0x78] sm:$0xff]   ;;  %v254_v2 = vld [vmem:[%s354_s1 + $0x70] sm:$0xff]   ;;  %v256_v4 = vld [vmem:[%s354_s1 + $0x68] sm:$0xff]  }
   0x2   :  { %v253_v1 = vld [vmem:[%s354_s1 + $0x38] sm:$0xff]   ;;  %230 = vmatprep.subr.bf16.mxu0 %v252_v0  ;;  %v255_v3 = vld [vmem:[%s354_s1 + $0x30] sm:$0xff]   ;;  %v257_v5 = vld [vmem:[%s354_s1 + $0x28] sm:$0xff]  }
   0x3   :  { %231 = vmatpush3.bf16.msra.mxu0 %v253_v1  ;;  %v258_v6 = vld [vmem:[%s354_s1 + $0x60] sm:$0xff]   ;;  %v260_v8 = vld [vmem:[%s354_s1 + $0x58] sm:$0xff]   ;;  %v262_v10 = vld [vmem:[%s354_s1 + $0x50] sm:$0xff]  }
   0x4   :  { %232 = vmatprep.subr.bf16.mxu0 %v254_v2  ;;  %v259_v7 = vld [vmem:[%s354_s1 + $0x20] sm:$0xff]   ;;  %v261_v9 = vld [vmem:[%s354_s1 + $0x18] sm:$0xff]   ;;  %v263_v12 = vld [vmem:[%s354_s1 + $0x10] sm:$0xff]  }
   0x5   :  { %v270_v11 = vld [vmem:[%s355_s0 + $0x4] ss:$8 sps:$4 sm:$0xff]   ;;  %v268_v17 = vld [vmem:[%s355_s0] ss:$8 sps:$4 sm:$0xff]  }
   0x6   :  { %194 = vmatprep.mubr.bf16.mxu0 %v270_v11  ;;  %v264_v13 = vld [vmem:[%s354_s1 + $0x48] sm:$0xff]   ;;  %v266_v15 = vld [vmem:[%s354_s1 + $0x40] sm:$0xff]  }
   0x7   :  { %233 = vmatpush3.bf16.msra.mxu0 %v255_v3  ;;  %v265_v14 = vld [vmem:[%s354_s1 + $0x8] sm:$0xff]   ;;  %v267_v16 = vld [vmem:[%s354_s1] sm:$0xff]  }
   0x8   :  { %234 = vmatprep.subr.bf16.mxu0 %v256_v4  ;;  %v211_v19 = vld [vmem:[%s356_s2] ss:$0 sm:$0xff] }
   0xb   :  { %235 = vmatpush3.bf16.msra.mxu0 %v257_v5 }
   0xc   :  { %236 = vmatprep.subr.bf16.mxu0 %v258_v6 }
   0xf   :  { %237 = vmatpush3.bf16.msra.mxu0 %v259_v7 }
  0x10   :  { %238 = vmatprep.subr.bf16.mxu0 %v260_v8 }
  0x13   :  { %239 = vmatpush3.bf16.msra.mxu0 %v261_v9 }
  0x14   :  { %240 = vmatprep.subr.bf16.mxu0 %v262_v10 }
  0x17   :  { %241 = vmatpush3.bf16.msra.mxu0 %v263_v12 }
  0x18   :  { %242 = vmatprep.subr.bf16.mxu0 %v264_v13 }
  0x1b   :  { %243 = vmatpush3.bf16.msra.mxu0 %v265_v14 }
  0x1c   :  { %244 = vmatprep.subr.bf16.mxu0 %v266_v15 }
  0x1f   :  { %245 = vmatpush3.bf16.msra.mxu0 %v267_v16 }
  0x22   :  { %195 = vmatmul.mubr.bf16.vlgmr.msra.gmra.mxu0 %v268_v17 }
  0xe2   :  { %v246_v18 = vpop.f32.mrf.mxu0 }
  0xe4   :  { %v247_v20 = vpop.f32.mrf.mxu0 }
  0xe5   :  { %v248_v21 = vadd.f32 %v247_v20, %v246_v18 }
  0xe6   :  { %v249_v22 = vpop.f32.mrf.mxu0 }
  0xe7   :  { %v197_v23 = vadd.f32 %v248_v21, %v211_v19 }
  0xe8   :  { %v250_v24 = vpop.f32.mrf.mxu0 }
  0xe9   :  { %v203_v25 = vmax.f32 %v197_v23, 0.0  ;;  %v251_v26 = vadd.f32 %v250_v24, %v249_v22 }
  0xeb   :  { %205 = vst [vmem:[%s357_s3] sm:$0xff] %v203_v25  ;;  %v200_v27 = vadd.f32 %v251_v26, %v211_v19 }
  0xed   :  { %v204_v28 = vmax.f32 %v200_v27, 0.0 }
  0xef   :  { %206 = vst [vmem:[%s357_s3 + $0x8] sm:$0xff] %v204_v28 }

// kernel: autoencoder_conv_forward.13
= control target key start
LH: loop header
LB: loop body
LE: loop exit
PB: predicated region body
PF: predicated region fallthrough
CT: control target
= control target key end

     0   :  { %s648_s1 = inlined_call_operand.vmem [shape: bf16[512,128], index: 1, kind: input, shape index: {}]   ;;  %s649_s0 = inlined_call_operand.vmem [shape: bf16[16,512], index: 0, kind: input, shape index: {}]   ;;  %s650_s2 = inlined_call_operand.vmem [shape: f32[1,128], index: 2, kind: input, shape index: {}]   ;;  %s651_s3 = inlined_call_operand.vmem [shape: f32[16,128], index: 3, kind: output, shape index: {}]  }
   0x1   :  { %v473_v0 = vld [vmem:[%s648_s1 + $0x78] sm:$0xff]   ;;  %v477_v4 = vld [vmem:[%s648_s1 + $0x70] sm:$0xff]   ;;  %v481_v8 = vld [vmem:[%s648_s1 + $0x68] sm:$0xff]  }
   0x2   :  { %v474_v1 = vld [vmem:[%s648_s1 + $0xf8] sm:$0xff]   ;;  %429 = vmatprep.subr.bf16.mxu0 %v473_v0  ;;  %v478_v5 = vld [vmem:[%s648_s1 + $0xf0] sm:$0xff]   ;;  %v482_v9 = vld [vmem:[%s648_s1 + $0xe8] sm:$0xff]  }
   0x3   :  { %v475_v2 = vld [vmem:[%s648_s1 + $0x38] sm:$0xff]   ;;  %451 = vmatprep.subr.bf16.mxu1 %v474_v1  ;;  %v479_v6 = vld [vmem:[%s648_s1 + $0x30] sm:$0xff]   ;;  %v483_v10 = vld [vmem:[%s648_s1 + $0x28] sm:$0xff]  }
   0x4   :  { %v476_v3 = vld [vmem:[%s648_s1 + $0xb8] sm:$0xff]   ;;  %430 = vmatpush3.bf16.msra.mxu0 %v475_v2  ;;  %v480_v7 = vld [vmem:[%s648_s1 + $0xb0] sm:$0xff]   ;;  %v484_v11 = vld [vmem:[%s648_s1 + $0xa8] sm:$0xff]  }
   0x5   :  { %452 = vmatpush3.bf16.msra.mxu1 %v476_v3  ;;  %431 = vmatprep.subr.bf16.mxu0 %v477_v4  ;;  %v485_v12 = vld [vmem:[%s648_s1 + $0x60] sm:$0xff]   ;;  %v489_v16 = vld [vmem:[%s648_s1 + $0x58] sm:$0xff]   ;;  %v493_v20 = vld [vmem:[%s648_s1 + $0x50] sm:$0xff]  }
   0x6   :  { %453 = vmatprep.subr.bf16.mxu1 %v478_v5  ;;  %v486_v13 = vld [vmem:[%s648_s1 + $0xe0] sm:$0xff]   ;;  %v490_v17 = vld [vmem:[%s648_s1 + $0xd8] sm:$0xff]   ;;  %v494_v21 = vld [vmem:[%s648_s1 + $0xd0] sm:$0xff]  }
   0x7   :  { %v487_v14 = vld [vmem:[%s648_s1 + $0x20] sm:$0xff]   ;;  %v491_v18 = vld [vmem:[%s648_s1 + $0x18] sm:$0xff]   ;;  %v495_v22 = vld [vmem:[%s648_s1 + $0x10] sm:$0xff]  }
   0x8   :  { %432 = vmatpush3.bf16.msra.mxu0 %v479_v6  ;;  %v488_v15 = vld [vmem:[%s648_s1 + $0xa0] sm:$0xff]   ;;  %v492_v19 = vld [vmem:[%s648_s1 + $0x98] sm:$0xff]   ;;  %v496_v23 = vld [vmem:[%s648_s1 + $0x90] sm:$0xff]  }
   0x9   :  { %454 = vmatpush3.bf16.msra.mxu1 %v480_v7  ;;  %433 = vmatprep.subr.bf16.mxu0 %v481_v8  ;;  %v497_v24 = vld [vmem:[%s648_s1 + $0x48] sm:$0xff]   ;;  %v501_v28 = vld [vmem:[%s648_s1 + $0x40] sm:$0xff]  }
   0xa   :  { %455 = vmatprep.subr.bf16.mxu1 %v482_v9  ;;  %v498_v25 = vld [vmem:[%s648_s1 + $0xc8] sm:$0xff]   ;;  %v502_v29 = vld [vmem:[%s648_s1 + $0xc0] sm:$0xff]  }
   0xb   :  { %v499_v26 = vld [vmem:[%s648_s1 + $0x8] sm:$0xff]   ;;  %v503_v30 = vld [vmem:[%s648_s1] sm:$0xff]  }
   0xc   :  { %434 = vmatpush3.bf16.msra.mxu0 %v483_v10  ;;  %v500_v27 = vld [vmem:[%s648_s1 + $0x88] sm:$0xff]   ;;  %v504_v31 = vld [vmem:[%s648_s1 + $0x80] sm:$0xff]  }
   0xd   :  { %456 = vmatpush3.bf16.msra.mxu1 %v484_v11  ;;  %435 = vmatprep.subr.bf16.mxu0 %v485_v12  ;;  %v505_v32 = vld [vmem:[%s649_s0] ss:$16 sps:$4 sm:$0xff]   ;;  %v507_v33 = vld [vmem:[%s649_s0 + $0x4] ss:$16 sps:$4 sm:$0xff]   ;;  %v508_v34 = vld [vmem:[%s649_s0 + $0x8] ss:$16 sps:$4 sm:$0xff]  }
   0xe   :  { %457 = vmatprep.subr.bf16.mxu1 %v486_v13  ;;  %v510_v35 = vld [vmem:[%s649_s0 + $0xc] ss:$16 sps:$4 sm:$0xff]   ;;  %334 = vmatprep.mubr.bf16.mxu0 %v507_v33  ;;  %v392_v38 = vld [vmem:[%s650_s2] ss:$0 sm:$0xff] }
   0xf   :  { %375 = vmatprep.mubr.bf16.mxu1 %v510_v35 }
  0x10   :  { %436 = vmatpush3.bf16.msra.mxu0 %v487_v14 }
  0x11   :  { %458 = vmatpush3.bf16.msra.mxu1 %v488_v15  ;;  %437 = vmatprep.subr.bf16.mxu0 %v489_v16 }
  0x12   :  { %459 = vmatprep.subr.bf16.mxu1 %v490_v17 }
  0x14   :  { %438 = vmatpush3.bf16.msra.mxu0 %v491_v18 }
  0x15   :  { %460 = vmatpush3.bf16.msra.mxu1 %v492_v19  ;;  %439 = vmatprep.subr.bf16.mxu0 %v493_v20 }
  0x16   :  { %461 = vmatprep.subr.bf16.mxu1 %v494_v21 }
  0x18   :  { %440 = vmatpush3.bf16.msra.mxu0 %v495_v22 }
  0x19   :  { %462 = vmatpush3.bf16.msra.mxu1 %v496_v23  ;;  %441 = vmatprep.subr.bf16.mxu0 %v497_v24 }
  0x1a   :  { %463 = vmatprep.subr.bf16.mxu1 %v498_v25 }
  0x1c   :  { %442 = vmatpush3.bf16.msra.mxu0 %v499_v26 }
  0x1d   :  { %464 = vmatpush3.bf16.msra.mxu1 %v500_v27  ;;  %443 = vmatprep.subr.bf16.mxu0 %v501_v28 }
  0x1e   :  { %465 = vmatprep.subr.bf16.mxu1 %v502_v29 }
  0x20   :  { %444 = vmatpush3.bf16.msra.mxu0 %v503_v30 }
  0x21   :  { %466 = vmatpush3.bf16.msra.mxu1 %v504_v31 }
  0x23   :  { %335 = vmatmul.mubr.bf16.vlgmr.msra.gmra.mxu0 %v505_v32 }
  0x24   :  { %376 = vmatmul.mubr.bf16.vlgmr.msra.gmra.mxu1 %v508_v34 }
  0xe3   :  { %v445_v36 = vpop.f32.mrf.mxu0 }
  0xe4   :  { %v467_v37 = vpop.f32.mrf.mxu1 }
  0xe5   :  { %v446_v39 = vpop.f32.mrf.mxu0 }
  0xe6   :  { %v447_v40 = vadd.f32 %v446_v39, %v445_v36  ;;  %v468_v41 = vpop.f32.mrf.mxu1 }
  0xe7   :  { %v448_v42 = vpop.f32.mrf.mxu0  ;;  %v469_v44 = vadd.f32 %v468_v41, %v467_v37 }
  0xe8   :  { %v337_v43 = vadd.f32 %v447_v40, %v392_v38  ;;  %v470_v45 = vpop.f32.mrf.mxu1 }
  0xe9   :  { %v449_v46 = vpop.f32.mrf.mxu0 }
  0xea   :  { %v378_v47 = vadd.f32 %v469_v44, %v337_v43  ;;  %v450_v48 = vadd.f32 %v449_v46, %v448_v42  ;;  %v471_v49 = vpop.f32.mrf.mxu1 }
  0xeb   :  { %v472_v52 = vadd.f32 %v471_v49, %v470_v45 }
  0xec   :  { %v384_v50 = vmax.f32 %v378_v47, 0.0  ;;  %v340_v51 = vadd.f32 %v450_v48, %v392_v38 }
  0xee   :  { %386 = vst [vmem:[%s651_s3] sm:$0xff] %v384_v50  ;;  %v381_v53 = vadd.f32 %v472_v52, %v340_v51 }
  0xf0   :  { %v385_v54 = vmax.f32 %v381_v53, 0.0 }
  0xf2   :  { %387 = vst [vmem:[%s651_s3 + $0x8] sm:$0xff] %v385_v54 }

// kernel: tile.30
= control target key start
LH: loop header
LB: loop body
LE: loop exit
PB: predicated region body
PF: predicated region fallthrough
CT: control target
= control target key end

     0   :  { %s22_s0 = inlined_call_operand.vmem [shape: f32[32], index: 0, kind: input, shape index: {}]   ;;  %s23_s1 = inlined_call_operand.vmem [shape: f32[4,32], index: 1, kind: output, shape index: {}]  }
   0x1   :  { %v4_v0 = vld [vmem:[%s22_s0] ss:$0 sm:$0xff] }
   0x2   :  { %5 = vst [vmem:[%s23_s1] sm:$0xf] %v4_v0 }

// kernel: mul.35
= control target key start
LH: loop header
LB: loop body
LE: loop exit
PB: predicated region body
PF: predicated region fallthrough
CT: control target
= control target key end

     0   :  { %vm8_vm0 = vcmask 261120   ;;  %s40_s8 = smov 32   ;;  %s41_s9 = smov 64   ;;  %vm14_vm1 = vcmask 1048320   ;;  %vm20_vm2 = vcmask 785920   ;;  %vm26_vm3 = vcmask 523520   ;;  %s58_s0 = inlined_call_operand.vmem [shape: f32[4,32], index: 0, kind: input, shape index: {}]   ;;  %s59_s1 = inlined_call_operand.vmem [shape: f32[128], index: 1, kind: output, shape index: {}]  }
   0x1   :  { %v5_v0 = vld [vmem:[%s58_s0] sm:$0xf]  ;;  %s39_s0 = smov 96  }
   0x2   :  { %6 = vst [vmem:[#allocation1] sm:$0xf] %v5_v0 }
   0x9   :  { %v11_v1 = vld [vmem:[#allocation1 + $0x3] sm:$0x1]   ;;  %v23_v2 = vld [vmem:[#allocation1 + $0x1] sm:$0x1]   ;;  %v7_v3 = vld [vmem:[#allocation1] sm:$0x1]  }
   0xa   :  { %12 = vrot.lane.b32.xlu0 %v11_v1, %s39_s0  ;;  %24 = vrot.lane.b32.xlu1 %v23_v2, %s40_s8  ;;  %v17_v4 = vld [vmem:[#allocation1 + $0x2] sm:$0x1]   ;;  %9 = vst.msk [vmem:[#allocation0] sm:$0x1] %vm8_vm0, %v7_v3  }
   0xe   :  { %18 = vrot.lane.b32.xlu0 %v17_v4, %s41_s9 }
  0x7c   :  { %v13_v5 = vpop.permute.xlu0 %12   ;;  %v25_v6 = vpop.permute.xlu1 %24  }
  0x7d   :  { %15 = vst.msk [vmem:[#allocation0] sm:$0x1] %vm14_vm1, %v13_v5  }
  0x80   :  { %v19_v7 = vpop.permute.xlu0 %18  }
  0x81   :  { %21 = vst.msk [vmem:[#allocation0] sm:$0x1] %vm20_vm2, %v19_v7  }
  0x82   :  { %27 = vst.msk [vmem:[#allocation0] sm:$0x1] %vm26_vm3, %v25_v6  }
  0x89   :  { %v32_v8 = vld [vmem:[#allocation0] sm:$0x1] }
  0x8a   :  { %35 = vst [vmem:[%s59_s1] sm:$0x1] %v32_v8 }

// kernel: autoencoder_conv_forward.15
= control target key start
LH: loop header
LB: loop body
LE: loop exit
PB: predicated region body
PF: predicated region fallthrough
CT: control target
= control target key end

     0   :  { %v197_v0 = vmov 0.0   ;;  %vm198_vm0 = vmmov 0   ;;  %s255_s1 = inlined_call_operand.vmem [shape: bf16[128,128], index: 1, kind: input, shape index: {}]   ;;  %s256_s0 = inlined_call_operand.vmem [shape: bf16[16,128], index: 0, kind: input, shape index: {}]   ;;  %s257_s2 = inlined_call_operand.vmem [shape: f32[1,128], index: 2, kind: input, shape index: {}]   ;;  %s258_s3 = inlined_call_operand.vmem [shape: f32[16,128], index: 3, kind: output, shape index: {}]  }
   0x1   :  { %166 = vmatprep.subr.bf16.mxu0 %v197_v0  ;;  %v188_v1 = vld [vmem:[%s255_s1 + $0x38] sm:$0xff]   ;;  %182 = vmatprep.mubr.msk.bf16.mxu0 %vm198_vm0, %v197_v0  ;;  %v189_v2 = vld [vmem:[%s255_s1 + $0x30] sm:$0xff]   ;;  %v190_v3 = vld [vmem:[%s255_s1 + $0x28] sm:$0xff]  }
   0x2   :  { %167 = vmatpush3.bf16.msra.mxu0 %v188_v1  ;;  %v191_v4 = vld [vmem:[%s255_s1 + $0x20] sm:$0xff]   ;;  %v192_v5 = vld [vmem:[%s255_s1 + $0x18] sm:$0xff]   ;;  %v193_v6 = vld [vmem:[%s255_s1 + $0x10] sm:$0xff]  }
   0x3   :  { %168 = vmatprep.subr.bf16.mxu0 %v197_v0  ;;  %v194_v7 = vld [vmem:[%s255_s1 + $0x8] sm:$0xff]   ;;  %v195_v8 = vld [vmem:[%s255_s1] sm:$0xff]  }
   0x4   :  { %v196_v9 = vld [vmem:[%s256_s0] sm:$0xff]  }
   0x5   :  { %v147_v10 = vld [vmem:[%s257_s2] ss:$0 sm:$0xff] }
   0x6   :  { %169 = vmatpush3.bf16.msra.mxu0 %v189_v2 }
   0x7   :  { %170 = vmatprep.subr.bf16.mxu0 %v197_v0 }
   0xa   :  { %171 = vmatpush3.bf16.msra.mxu0 %v190_v3 }
   0xb   :  { %172 = vmatprep.subr.bf16.mxu0 %v197_v0 }
   0xe   :  { %173 = vmatpush3.bf16.msra.mxu0 %v191_v4 }
   0xf   :  { %174 = vmatprep.subr.bf16.mxu0 %v197_v0 }
  0x12   :  { %175 = vmatpush3.bf16.msra.mxu0 %v192_v5 }
  0x13   :  { %176 = vmatprep.subr.bf16.mxu0 %v197_v0 }
  0x16   :  { %177 = vmatpush3.bf16.msra.mxu0 %v193_v6 }
  0x17   :  { %178 = vmatprep.subr.bf16.mxu0 %v197_v0 }
  0x1a   :  { %179 = vmatpush3.bf16.msra.mxu0 %v194_v7 }
  0x1b   :  { %180 = vmatprep.subr.bf16.mxu0 %v197_v0 }
  0x1e   :  { %181 = vmatpush3.bf16.msra.mxu0 %v195_v8 }
  0x21   :  { %183 = vmatmul.mubr.bf16.vlgmr.msra.gmra.mxu0 %v196_v9 }
  0xe1   :  { %v128_v11 = vpop.f32.mrf.mxu0 }
  0xe2   :  { %v129_v12 = vadd.f32 %v147_v10, %v128_v11 }
  0xe3   :  { %v184_v13 = vpop.f32.mrf.mxu0 }
  0xe4   :  { %vm135_vm1 = vcmp.gt.f32.partialorder %v129_v12, 0.0  ;;  %v137_v14 = vmul.f32 0.2, %v129_v12 }
  0xe5   :  { %v131_v15 = vpop.f32.mrf.mxu0 }
  0xe6   :  { %v139_v16 = vsel %vm135_vm1, %v129_v12, %v137_v14  ;;  %v132_v17 = vadd.f32 %v147_v10, %v131_v15 }
  0xe7   :  { %141 = vst [vmem:[%s258_s3] sm:$0xff] %v139_v16  ;;  %v185_v18 = vpop.f32.mrf.mxu0 }
  0xe8   :  { %vm136_vm2 = vcmp.gt.f32.partialorder %v132_v17, 0.0  ;;  %v138_v19 = vmul.f32 0.2, %v132_v17 }
  0xea   :  { %v140_v20 = vsel %vm136_vm2, %v132_v17, %v138_v19 }
  0xeb   :  { %142 = vst [vmem:[%s258_s3 + $0x8] sm:$0xff] %v140_v20 }

// kernel: tile.38
= control target key start
LH: loop header
LB: loop body
LE: loop exit
PB: predicated region body
PF: predicated region fallthrough
CT: control target
= control target key end

     0   :  { %s22_s0 = inlined_call_operand.vmem [shape: f32[16], index: 0, kind: input, shape index: {}]   ;;  %s23_s1 = inlined_call_operand.vmem [shape: f32[4,16], index: 1, kind: output, shape index: {}]  }
   0x1   :  { %v4_v0 = vld [vmem:[%s22_s0] ss:$0 sm:$0xff] }
   0x2   :  { %5 = vst [vmem:[%s23_s1] sm:$0xf] %v4_v0 }

// kernel: mul.39
= control target key start
LH: loop header
LB: loop body
LE: loop exit
PB: predicated region body
PF: predicated region fallthrough
CT: control target
= control target key end

     0   :  { %vm8_vm0 = vcmask 130048   ;;  %s40_s8 = smov 16   ;;  %s41_s9 = smov 32   ;;  %vm14_vm1 = vcmask 523648   ;;  %vm20_vm2 = vcmask 392448   ;;  %vm26_vm3 = vcmask 261248   ;;  %s58_s0 = inlined_call_operand.vmem [shape: f32[4,16], index: 0, kind: input, shape index: {}]   ;;  %s59_s1 = inlined_call_operand.vmem [shape: f32[64], index: 1, kind: output, shape index: {}]  }
   0x1   :  { %v5_v0 = vld [vmem:[%s58_s0] sm:$0xf]  ;;  %s39_s0 = smov 48  }
   0x2   :  { %6 = vst [vmem:[#allocation1] sm:$0xf] %v5_v0 }
   0x9   :  { %v11_v1 = vld [vmem:[#allocation1 + $0x3] sm:$0x1]   ;;  %v23_v2 = vld [vmem:[#allocation1 + $0x1] sm:$0x1]   ;;  %v7_v3 = vld [vmem:[#allocation1] sm:$0x1]  }
   0xa   :  { %12 = vrot.lane.b32.xlu0 %v11_v1, %s39_s0  ;;  %24 = vrot.lane.b32.xlu1 %v23_v2, %s40_s8  ;;  %v17_v4 = vld [vmem:[#allocation1 + $0x2] sm:$0x1]   ;;  %9 = vst.msk [vmem:[#allocation0] sm:$0x1] %vm8_vm0, %v7_v3  }
   0xe   :  { %18 = vrot.lane.b32.xlu0 %v17_v4, %s41_s9 }
  0x7c   :  { %v13_v5 = vpop.permute.xlu0 %12   ;;  %v25_v6 = vpop.permute.xlu1 %24  }
  0x7d   :  { %15 = vst.msk [vmem:[#allocation0] sm:$0x1] %vm14_vm1, %v13_v5  }
  0x80   :  { %v19_v7 = vpop.permute.xlu0 %18  }
  0x81   :  { %21 = vst.msk [vmem:[#allocation0] sm:$0x1] %vm20_vm2, %v19_v7  }
  0x82   :  { %27 = vst.msk [vmem:[#allocation0] sm:$0x1] %vm26_vm3, %v25_v6  }
  0x89   :  { %v32_v8 = vld [vmem:[#allocation0] sm:$0x1] }
  0x8a   :  { %35 = vst [vmem:[%s59_s1] sm:$0x1] %v32_v8 }

// kernel: autoencoder_conv_forward.16
= control target key start
LH: loop header
LB: loop body
LE: loop exit
PB: predicated region body
PF: predicated region fallthrough
CT: control target
= control target key end

     0   :  { %v677_v33 = vmov 0.0   ;;  %vm678_vm0 = vmmov 0   ;;  %s843_s1 = inlined_call_operand.vmem [shape: bf16[640,128], index: 1, kind: input, shape index: {}]   ;;  %s844_s0 = inlined_call_operand.vmem [shape: bf16[16,640], index: 0, kind: input, shape index: {}]   ;;  %s845_s2 = inlined_call_operand.vmem [shape: f32[1,128], index: 2, kind: input, shape index: {}]   ;;  %s846_s3 = inlined_call_operand.vmem [shape: f32[16,128], index: 3, kind: output, shape index: {}]  }
   0x1   :  { %v630_v0 = vld [vmem:[%s843_s1 + $0x78] sm:$0xff]   ;;  %v634_v4 = vld [vmem:[%s843_s1 + $0x70] sm:$0xff]   ;;  %v638_v8 = vld [vmem:[%s843_s1 + $0x68] sm:$0xff]  }
   0x2   :  { %v631_v1 = vld [vmem:[%s843_s1 + $0x38] sm:$0xff]   ;;  %555 = vmatprep.subr.bf16.mxu0 %v630_v0  ;;  %v635_v5 = vld [vmem:[%s843_s1 + $0x30] sm:$0xff]   ;;  %v639_v9 = vld [vmem:[%s843_s1 + $0x28] sm:$0xff]  }
   0x3   :  { %v632_v2 = vld [vmem:[%s843_s1 + $0xf8] sm:$0xff]   ;;  %556 = vmatpush3.bf16.msra.mxu0 %v631_v1  ;;  %v636_v6 = vld [vmem:[%s843_s1 + $0xf0] sm:$0xff]   ;;  %v640_v10 = vld [vmem:[%s843_s1 + $0xe8] sm:$0xff]  }
   0x4   :  { %v633_v3 = vld [vmem:[%s843_s1 + $0xb8] sm:$0xff]   ;;  %577 = vmatprep.subr.bf16.mxu1 %v632_v2  ;;  %557 = vmatprep.subr.bf16.mxu0 %v634_v4  ;;  %v637_v7 = vld [vmem:[%s843_s1 + $0xb0] sm:$0xff]   ;;  %v641_v11 = vld [vmem:[%s843_s1 + $0xa8] sm:$0xff]  }
   0x5   :  { %578 = vmatpush3.bf16.msra.mxu1 %v633_v3  ;;  %v642_v12 = vld [vmem:[%s843_s1 + $0x60] sm:$0xff]   ;;  %v646_v16 = vld [vmem:[%s843_s1 + $0x58] sm:$0xff]   ;;  %v650_v20 = vld [vmem:[%s843_s1 + $0x50] sm:$0xff]  }
   0x6   :  { %579 = vmatprep.subr.bf16.mxu1 %v636_v6  ;;  %v643_v13 = vld [vmem:[%s843_s1 + $0x20] sm:$0xff]   ;;  %v647_v17 = vld [vmem:[%s843_s1 + $0x18] sm:$0xff]   ;;  %v651_v21 = vld [vmem:[%s843_s1 + $0x10] sm:$0xff]  }
   0x7   :  { %558 = vmatpush3.bf16.msra.mxu0 %v635_v5  ;;  %v644_v14 = vld [vmem:[%s843_s1 + $0xe0] sm:$0xff]   ;;  %v648_v18 = vld [vmem:[%s843_s1 + $0xd8] sm:$0xff]   ;;  %v652_v22 = vld [vmem:[%s843_s1 + $0xd0] sm:$0xff]  }
   0x8   :  { %559 = vmatprep.subr.bf16.mxu0 %v638_v8  ;;  %v645_v15 = vld [vmem:[%s843_s1 + $0xa0] sm:$0xff]   ;;  %v649_v19 = vld [vmem:[%s843_s1 + $0x98] sm:$0xff]   ;;  %v653_v23 = vld [vmem:[%s843_s1 + $0x90] sm:$0xff]  }
   0x9   :  { %580 = vmatpush3.bf16.msra.mxu1 %v637_v7  ;;  %v654_v24 = vld [vmem:[%s843_s1 + $0x48] sm:$0xff]   ;;  %v658_v28 = vld [vmem:[%s843_s1 + $0x40] sm:$0xff]   ;;  %v668_v37 = vld [vmem:[%s843_s1 + $0x138] sm:$0xff]  }
   0xa   :  { %581 = vmatprep.subr.bf16.mxu1 %v640_v10  ;;  %v655_v25 = vld [vmem:[%s843_s1 + $0x8] sm:$0xff]   ;;  %v659_v29 = vld [vmem:[%s843_s1] sm:$0xff]   ;;  %v669_v38 = vld [vmem:[%s843_s1 + $0x130] sm:$0xff]  }
   0xb   :  { %560 = vmatpush3.bf16.msra.mxu0 %v639_v9  ;;  %v656_v26 = vld [vmem:[%s843_s1 + $0xc8] sm:$0xff]   ;;  %v660_v30 = vld [vmem:[%s843_s1 + $0xc0] sm:$0xff]   ;;  %v672_v41 = vld [vmem:[%s843_s1 + $0x118] sm:$0xff]  }
   0xc   :  { %561 = vmatprep.subr.bf16.mxu0 %v642_v12  ;;  %v657_v27 = vld [vmem:[%s843_s1 + $0x88] sm:$0xff]   ;;  %v661_v31 = vld [vmem:[%s844_s0] ss:$20 sps:$4 sm:$0xff]   ;;  %v663_v32 = vld [vmem:[%s844_s0 + $0x4] ss:$20 sps:$4 sm:$0xff]  }
   0xd   :  { %582 = vmatpush3.bf16.msra.mxu1 %v641_v11  ;;  %v664_v34 = vld [vmem:[%s843_s1 + $0x80] sm:$0xff]   ;;  %406 = vmatprep.mubr.bf16.mxu0 %v663_v32  ;;  %v665_v35 = vld [vmem:[%s844_s0 + $0x8] ss:$20 sps:$4 sm:$0xff]   ;;  %v673_v42 = vld [vmem:[%s843_s1 + $0x110] sm:$0xff]  }
   0xe   :  { %583 = vmatprep.subr.bf16.mxu1 %v644_v14  ;;  %v667_v36 = vld [vmem:[%s844_s0 + $0xc] ss:$20 sps:$4 sm:$0xff]   ;;  %v676_v45 = vld [vmem:[%s844_s0 + $0x10] ss:$20 sps:$4 sm:$0xff]  }
   0xf   :  { %562 = vmatpush3.bf16.msra.mxu0 %v643_v13  ;;  %447 = vmatprep.mubr.bf16.mxu1 %v667_v36  ;;  %v670_v39 = vld [vmem:[%s843_s1 + $0x128] sm:$0xff]   ;;  %v671_v40 = vld [vmem:[%s843_s1 + $0x120] sm:$0xff]  }
  0x10   :  { %563 = vmatprep.subr.bf16.mxu0 %v646_v16  ;;  %v674_v43 = vld [vmem:[%s843_s1 + $0x108] sm:$0xff]   ;;  %v675_v44 = vld [vmem:[%s843_s1 + $0x100] sm:$0xff]  }
  0x11   :  { %584 = vmatpush3.bf16.msra.mxu1 %v645_v15  ;;  %v509_v52 = vld [vmem:[%s845_s2] ss:$0 sm:$0xff] }
  0x12   :  { %585 = vmatprep.subr.bf16.mxu1 %v648_v18 }
  0x13   :  { %564 = vmatpush3.bf16.msra.mxu0 %v647_v17 }
  0x14   :  { %565 = vmatprep.subr.bf16.mxu0 %v650_v20 }
  0x15   :  { %586 = vmatpush3.bf16.msra.mxu1 %v649_v19 }
  0x16   :  { %587 = vmatprep.subr.bf16.mxu1 %v652_v22 }
  0x17   :  { %566 = vmatpush3.bf16.msra.mxu0 %v651_v21 }
  0x18   :  { %567 = vmatprep.subr.bf16.mxu0 %v654_v24 }
  0x19   :  { %588 = vmatpush3.bf16.msra.mxu1 %v653_v23 }
  0x1a   :  { %589 = vmatprep.subr.bf16.mxu1 %v656_v26 }
  0x1b   :  { %568 = vmatpush3.bf16.msra.mxu0 %v655_v25 }
  0x1c   :  { %569 = vmatprep.subr.bf16.mxu0 %v658_v28 }
  0x1d   :  { %590 = vmatpush3.bf16.msra.mxu1 %v657_v27 }
  0x1e   :  { %591 = vmatprep.subr.bf16.mxu1 %v660_v30 }
  0x1f   :  { %570 = vmatpush3.bf16.msra.mxu0 %v659_v29 }
  0x20   :  { %608 = vmatprep.subr.bf16.mxu0 %v677_v33 }
  0x21   :  { %592 = vmatpush3.bf16.msra.mxu1 %v664_v34 }
  0x22   :  { %407 = vmatmul.mubr.bf16.vlgmr.msra.gmra.mxu0 %v661_v31 }
  0x23   :  { %624 = vmatprep.mubr.msk.bf16.mxu0 %vm678_vm0, %v677_v33  ;;  %609 = vmatpush3.bf16.msra.mxu0 %v668_v37 }
  0x24   :  { %448 = vmatmul.mubr.bf16.vlgmr.msra.gmra.mxu1 %v665_v35  ;;  %610 = vmatprep.subr.bf16.mxu0 %v677_v33 }
  0x27   :  { %611 = vmatpush3.bf16.msra.mxu0 %v669_v38 }
  0x28   :  { %612 = vmatprep.subr.bf16.mxu0 %v677_v33 }
  0x2b   :  { %613 = vmatpush3.bf16.msra.mxu0 %v670_v39 }
  0x2c   :  { %614 = vmatprep.subr.bf16.mxu0 %v677_v33 }
  0x2f   :  { %615 = vmatpush3.bf16.msra.mxu0 %v671_v40 }
  0x30   :  { %616 = vmatprep.subr.bf16.mxu0 %v677_v33 }
  0x33   :  { %617 = vmatpush3.bf16.msra.mxu0 %v672_v41 }
  0x34   :  { %618 = vmatprep.subr.bf16.mxu0 %v677_v33 }
  0x37   :  { %619 = vmatpush3.bf16.msra.mxu0 %v673_v42 }
  0x38   :  { %620 = vmatprep.subr.bf16.mxu0 %v677_v33 }
  0x3b   :  { %621 = vmatpush3.bf16.msra.mxu0 %v674_v43 }
  0x3c   :  { %622 = vmatprep.subr.bf16.mxu0 %v677_v33 }
  0x3f   :  { %623 = vmatpush3.bf16.msra.mxu0 %v675_v44 }
  0x42   :  { %625 = vmatmul.mubr.bf16.vlgmr.msra.gmra.mxu0 %v676_v45 }
  0xe2   :  { %v571_v46 = vpop.f32.mrf.mxu0 }
  0xe4   :  { %v572_v47 = vpop.f32.mrf.mxu0  ;;  %v593_v48 = vpop.f32.mrf.mxu1 }
  0xe5   :  { %v573_v51 = vadd.f32 %v572_v47, %v571_v46 }
  0xe6   :  { %v574_v49 = vpop.f32.mrf.mxu0  ;;  %v594_v50 = vpop.f32.mrf.mxu1 }
  0xe7   :  { %v409_v55 = vadd.f32 %v573_v51, %v509_v52  ;;  %v595_v56 = vadd.f32 %v594_v50, %v593_v48 }
  0xe8   :  { %v575_v53 = vpop.f32.mrf.mxu0  ;;  %v596_v54 = vpop.f32.mrf.mxu1 }
  0xe9   :  { %v576_v57 = vadd.f32 %v575_v53, %v574_v49  ;;  %v450_v61 = vadd.f32 %v595_v56, %v409_v55 }
  0xea   :  { %v597_v58 = vpop.f32.mrf.mxu1 }
  0xeb   :  { %v412_v59 = vadd.f32 %v576_v57, %v509_v52  ;;  %v598_v60 = vadd.f32 %v597_v58, %v596_v54 }
  0xed   :  { %v453_v2 = vadd.f32 %v598_v60, %v412_v59 }
 0x102   :  { %v490_v62 = vpop.f32.mrf.mxu0 }
 0x103   :  { %v491_v63 = vadd.f32 %v490_v62, %v450_v61 }
 0x104   :  { %v626_v0 = vpop.f32.mrf.mxu0 }
 0x105   :  { %vm497_vm1 = vcmp.gt.f32.partialorder %v491_v63, 0.0  ;;  %v499_v1 = vmul.f32 0.2, %v491_v63 }
 0x106   :  { %v493_v3 = vpop.f32.mrf.mxu0 }
 0x107   :  { %v501_v4 = vsel %vm497_vm1, %v491_v63, %v499_v1  ;;  %v494_v5 = vadd.f32 %v493_v3, %v453_v2 }
 0x108   :  { %503 = vst [vmem:[%s846_s3] sm:$0xff] %v501_v4  ;;  %v627_v6 = vpop.f32.mrf.mxu0 }
 0x109   :  { %vm498_vm2 = vcmp.gt.f32.partialorder %v494_v5, 0.0  ;;  %v500_v7 = vmul.f32 0.2, %v494_v5 }
 0x10b   :  { %v502_v8 = vsel %vm498_vm2, %v494_v5, %v500_v7 }
 0x10c   :  { %504 = vst [vmem:[%s846_s3 + $0x8] sm:$0xff] %v502_v8 }

// kernel: autoencoder_conv_forward.17
= control target key start
LH: loop header
LB: loop body
LE: loop exit
PB: predicated region body
PF: predicated region fallthrough
CT: control target
= control target key end

     0   :  { %s618_s1 = inlined_call_operand.vmem [shape: bf16[384,128], index: 1, kind: input, shape index: {}]   ;;  %s619_s0 = inlined_call_operand.vmem [shape: bf16[32,384], index: 0, kind: input, shape index: {}]   ;;  %s620_s2 = inlined_call_operand.vmem [shape: f32[1,128], index: 2, kind: input, shape index: {}]   ;;  %s621_s3 = inlined_call_operand.vmem [shape: f32[32,128], index: 3, kind: output, shape index: {}]  }
   0x1   :  { %v461_v0 = vld [vmem:[%s618_s1 + $0x78] sm:$0xff]   ;;  %v463_v2 = vld [vmem:[%s618_s1 + $0x70] sm:$0xff]   ;;  %v466_v5 = vld [vmem:[%s618_s1 + $0x68] sm:$0xff]  }
   0x2   :  { %v462_v1 = vld [vmem:[%s618_s1 + $0x38] sm:$0xff]   ;;  %403 = vmatprep.subr.bf16.mxu0 %v461_v0  ;;  %v465_v4 = vld [vmem:[%s618_s1 + $0x30] sm:$0xff]   ;;  %v468_v7 = vld [vmem:[%s618_s1 + $0x28] sm:$0xff]  }
   0x3   :  { %404 = vmatpush3.bf16.msra.mxu0 %v462_v1  ;;  %v464_v3 = vld [vmem:[%s618_s1 + $0xb8] sm:$0xff]   ;;  %v467_v6 = vld [vmem:[%s618_s1 + $0xb0] sm:$0xff]   ;;  %v469_v8 = vld [vmem:[%s618_s1 + $0x60] sm:$0xff]  }
   0x4   :  { %405 = vmatprep.subr.bf16.mxu0 %v463_v2  ;;  %441 = vmatprep.subr.bf16.mxu1 %v464_v3  ;;  %v470_v9 = vld [vmem:[%s618_s1 + $0xa8] sm:$0xff]   ;;  %v471_v10 = vld [vmem:[%s618_s1 + $0x20] sm:$0xff]   ;;  %v472_v11 = vld [vmem:[%s618_s1 + $0x58] sm:$0xff]  }
   0x5   :  { %442 = vmatpush3.bf16.msra.mxu1 %v464_v3  ;;  %v473_v12 = vld [vmem:[%s618_s1 + $0xa0] sm:$0xff]   ;;  %v474_v13 = vld [vmem:[%s618_s1 + $0x18] sm:$0xff]   ;;  %v475_v15 = vld [vmem:[%s618_s1 + $0x50] sm:$0xff]  }
   0x6   :  { %443 = vmatprep.subr.bf16.mxu1 %v467_v6  ;;  %v476_v14 = vld [vmem:[%s618_s1 + $0x98] sm:$0xff]   ;;  %v477_v16 = vld [vmem:[%s618_s1 + $0x10] sm:$0xff]   ;;  %v478_v18 = vld [vmem:[%s618_s1 + $0x48] sm:$0xff]  }
   0x7   :  { %406 = vmatpush3.bf16.msra.mxu0 %v465_v4  ;;  %v479_v17 = vld [vmem:[%s618_s1 + $0x90] sm:$0xff]   ;;  %v480_v19 = vld [vmem:[%s618_s1 + $0x8] sm:$0xff]   ;;  %v481_v20 = vld [vmem:[%s618_s1 + $0x40] sm:$0xff]  }
   0x8   :  { %407 = vmatprep.subr.bf16.mxu0 %v466_v5  ;;  %v482_v21 = vld [vmem:[%s618_s1 + $0x88] sm:$0xff]   ;;  %v486_v22 = vld [vmem:[%s619_s0 + $0x4] ss:$12 sps:$4 sm:$0xff]   ;;  %v372_v32 = vld [vmem:[%s620_s2] ss:$0 sm:$0xff] }
   0x9   :  { %444 = vmatpush3.bf16.msra.mxu1 %v467_v6  ;;  %v483_v23 = vld [vmem:[%s618_s1] sm:$0xff]   ;;  %286 = vmatprep.mubr.bf16.mxu0 %v486_v22  ;;  %v488_v24 = vld [vmem:[%s619_s0 + $0x8] ss:$12 sps:$4 sm:$0xff]  }
   0xa   :  { %445 = vmatprep.subr.bf16.mxu1 %v470_v9  ;;  %v487_v25 = vld [vmem:[%s618_s1 + $0x80] sm:$0xff]   ;;  %457 = vmatprep.mubr.bf16.mxu1 %v488_v24  ;;  %v490_v27 = vld [vmem:[%s619_s0 + $0x1c] ss:$12 sps:$4 sm:$0xff]  }
   0xb   :  { %408 = vmatpush3.bf16.msra.mxu0 %v468_v7  ;;  %v484_v26 = vld [vmem:[%s619_s0] ss:$12 sps:$4 sm:$0xff]   ;;  %v492_v29 = vld [vmem:[%s619_s0 + $0x18] ss:$12 sps:$4 sm:$0xff]  }
   0xc   :  { %409 = vmatprep.subr.bf16.mxu0 %v469_v8  ;;  %v489_v28 = vld [vmem:[%s619_s0 + $0x20] ss:$12 sps:$4 sm:$0xff]  }
   0xd   :  { %446 = vmatpush3.bf16.msra.mxu1 %v470_v9 }
   0xe   :  { %447 = vmatprep.subr.bf16.mxu1 %v473_v12 }
   0xf   :  { %410 = vmatpush3.bf16.msra.mxu0 %v471_v10 }
  0x10   :  { %411 = vmatprep.subr.bf16.mxu0 %v472_v11 }
  0x11   :  { %448 = vmatpush3.bf16.msra.mxu1 %v473_v12 }
  0x12   :  { %449 = vmatprep.subr.bf16.mxu1 %v476_v14 }
  0x13   :  { %412 = vmatpush3.bf16.msra.mxu0 %v474_v13 }
  0x14   :  { %413 = vmatprep.subr.bf16.mxu0 %v475_v15 }
  0x15   :  { %450 = vmatpush3.bf16.msra.mxu1 %v476_v14 }
  0x16   :  { %451 = vmatprep.subr.bf16.mxu1 %v479_v17 }
  0x17   :  { %414 = vmatpush3.bf16.msra.mxu0 %v477_v16 }
  0x18   :  { %415 = vmatprep.subr.bf16.mxu0 %v478_v18 }
  0x19   :  { %452 = vmatpush3.bf16.msra.mxu1 %v479_v17 }
  0x1a   :  { %453 = vmatprep.subr.bf16.mxu1 %v482_v21 }
  0x1b   :  { %416 = vmatpush3.bf16.msra.mxu0 %v480_v19 }
  0x1c   :  { %417 = vmatprep.subr.bf16.mxu0 %v481_v20 }
  0x1d   :  { %454 = vmatpush3.bf16.msra.mxu1 %v482_v21 }
  0x1e   :  { %455 = vmatprep.subr.bf16.mxu1 %v487_v25 }
  0x1f   :  { %418 = vmatpush3.bf16.msra.mxu0 %v483_v23 }
  0x21   :  { %456 = vmatpush3.bf16.msra.mxu1 %v487_v25 }
  0x22   :  { %287 = vmatmul.mubr.bf16.vlgmr.msra.gmra.mxu0 %v484_v26 }
  0x23   :  { %294 = vmatprep.mubr.bf16.mxu0 %v490_v27 }
  0x24   :  { %458 = vmatmul.mubr.bf16.vlgmr.msra.gmra.mxu1 %v489_v28 }
  0x2a   :  { %295 = vmatmul.mubr.bf16.gmra.mxu0 %v492_v29 }
  0xe2   :  { %v419_v30 = vpop.f32.mrf.mxu0 }
  0xe4   :  { %v420_v31 = vpop.f32.mrf.mxu0  ;;  %v459_v34 = vpop.f32.mrf.mxu1 }
  0xe5   :  { %v421_v33 = vadd.f32 %v420_v31, %v419_v30 }
  0xe6   :  { %v422_v35 = vpop.f32.mrf.mxu0  ;;  %v337_v37 = vpop.f32.mrf.mxu1 }
  0xe7   :  { %v289_v36 = vadd.f32 %v421_v33, %v372_v32 }
  0xe8   :  { %v423_v38 = vpop.f32.mrf.mxu0  ;;  %v460_v41 = vpop.f32.mrf.mxu1 }
  0xe9   :  { %v424_v39 = vadd.f32 %v423_v38, %v422_v35  ;;  %v338_v40 = vadd.f32 %v337_v37, %v289_v36 }
  0xea   :  { %v425_v42 = vpop.f32.mrf.mxu0  ;;  %v340_v45 = vpop.f32.mrf.mxu1 }
  0xeb   :  { %vm352_vm0 = vcmp.gt.f32.partialorder %v338_v40, 0.0  ;;  %v356_v43 = vmul.f32 0.2, %v338_v40  ;;  %v292_v44 = vadd.f32 %v424_v39, %v372_v32 }
  0xec   :  { %v426_v46 = vpop.f32.mrf.mxu0 }
  0xed   :  { %v360_v47 = vsel %vm352_vm0, %v338_v40, %v356_v43  ;;  %v427_v48 = vadd.f32 %v426_v46, %v425_v42  ;;  %v341_v49 = vadd.f32 %v340_v45, %v292_v44 }
  0xee   :  { %364 = vst [vmem:[%s621_s3] sm:$0xff] %v360_v47  ;;  %v428_v50 = vpop.f32.mrf.mxu0 }
  0xef   :  { %v297_v51 = vadd.f32 %v427_v48, %v372_v32  ;;  %vm353_vm1 = vcmp.gt.f32.partialorder %v341_v49, 0.0  ;;  %v357_v52 = vmul.f32 0.2, %v341_v49 }
  0xf0   :  { %v429_v53 = vpop.f32.mrf.mxu0 }
  0xf1   :  { %v346_v54 = vadd.f32 %v459_v34, %v297_v51  ;;  %v361_v55 = vsel %vm353_vm1, %v341_v49, %v357_v52  ;;  %v430_v56 = vadd.f32 %v429_v53, %v428_v50 }
  0xf2   :  { %365 = vst [vmem:[%s621_s3 + $0x8] sm:$0xff] %v361_v55 }
  0xf3   :  { %vm354_vm2 = vcmp.gt.f32.partialorder %v346_v54, 0.0  ;;  %v358_v57 = vmul.f32 0.2, %v346_v54  ;;  %v300_v58 = vadd.f32 %v430_v56, %v372_v32 }
  0xf5   :  { %v362_v59 = vsel %vm354_vm2, %v346_v54, %v358_v57  ;;  %v349_v60 = vadd.f32 %v460_v41, %v300_v58 }
  0xf6   :  { %366 = vst [vmem:[%s621_s3 + $0x10] sm:$0xff] %v362_v59 }
  0xf7   :  { %vm355_vm3 = vcmp.gt.f32.partialorder %v349_v60, 0.0  ;;  %v359_v61 = vmul.f32 0.2, %v349_v60 }
  0xf9   :  { %v363_v62 = vsel %vm355_vm3, %v349_v60, %v359_v61 }
  0xfa   :  { %367 = vst [vmem:[%s621_s3 + $0x18] sm:$0xff] %v363_v62 }

// kernel: tile.46
= control target key start
LH: loop header
LB: loop body
LE: loop exit
PB: predicated region body
PF: predicated region fallthrough
CT: control target
= control target key end

     0   :  { %s22_s0 = inlined_call_operand.vmem [shape: f32[8], index: 0, kind: input, shape index: {}]   ;;  %s23_s1 = inlined_call_operand.vmem [shape: f32[4,8], index: 1, kind: output, shape index: {}]  }
   0x1   :  { %v4_v0 = vld [vmem:[%s22_s0] ss:$0 sm:$0xff] }
   0x2   :  { %5 = vst [vmem:[%s23_s1] sm:$0xf] %v4_v0 }

// kernel: mul.42
= control target key start
LH: loop header
LB: loop body
LE: loop exit
PB: predicated region body
PF: predicated region fallthrough
CT: control target
= control target key end

     0   :  { %vm8_vm0 = vcmask 64512   ;;  %s40_s8 = smov 8   ;;  %s41_s9 = smov 16   ;;  %vm14_vm1 = vcmask 261312   ;;  %vm20_vm2 = vcmask 195712   ;;  %vm26_vm3 = vcmask 130112   ;;  %s58_s0 = inlined_call_operand.vmem [shape: f32[4,8], index: 0, kind: input, shape index: {}]   ;;  %s59_s1 = inlined_call_operand.vmem [shape: f32[32], index: 1, kind: output, shape index: {}]  }
   0x1   :  { %v5_v0 = vld [vmem:[%s58_s0] sm:$0xf]  ;;  %s39_s0 = smov 24  }
   0x2   :  { %6 = vst [vmem:[#allocation1] sm:$0xf] %v5_v0 }
   0x9   :  { %v11_v1 = vld [vmem:[#allocation1 + $0x3] sm:$0x1]   ;;  %v23_v2 = vld [vmem:[#allocation1 + $0x1] sm:$0x1]   ;;  %v7_v3 = vld [vmem:[#allocation1] sm:$0x1]  }
   0xa   :  { %12 = vrot.lane.b32.xlu0 %v11_v1, %s39_s0  ;;  %24 = vrot.lane.b32.xlu1 %v23_v2, %s40_s8  ;;  %v17_v4 = vld [vmem:[#allocation1 + $0x2] sm:$0x1]   ;;  %9 = vst.msk [vmem:[#allocation0] sm:$0x1] %vm8_vm0, %v7_v3  }
   0xe   :  { %18 = vrot.lane.b32.xlu0 %v17_v4, %s41_s9 }
  0x7c   :  { %v13_v5 = vpop.permute.xlu0 %12   ;;  %v25_v6 = vpop.permute.xlu1 %24  }
  0x7d   :  { %15 = vst.msk [vmem:[#allocation0] sm:$0x1] %vm14_vm1, %v13_v5  }
  0x80   :  { %v19_v7 = vpop.permute.xlu0 %18  }
  0x81   :  { %21 = vst.msk [vmem:[#allocation0] sm:$0x1] %vm20_vm2, %v19_v7  }
  0x82   :  { %27 = vst.msk [vmem:[#allocation0] sm:$0x1] %vm26_vm3, %v25_v6  }
  0x89   :  { %v32_v8 = vld [vmem:[#allocation0] sm:$0x1] }
  0x8a   :  { %35 = vst [vmem:[%s59_s1] sm:$0x1] %v32_v8 }

// kernel: autoencoder_conv_forward.18
= control target key start
LH: loop header
LB: loop body
LE: loop exit
PB: predicated region body
PF: predicated region fallthrough
CT: control target
= control target key end

     0   :  { %s749_s1 = inlined_call_operand.vmem [shape: bf16[256,128], index: 1, kind: input, shape index: {}]   ;;  %s750_s0 = inlined_call_operand.vmem [shape: bf16[128,256], index: 0, kind: input, shape index: {}]   ;;  %s751_s2 = inlined_call_operand.vmem [shape: f32[1,128], index: 2, kind: input, shape index: {}]   ;;  %s752_s3 = inlined_call_operand.vmem [shape: f32[128,128], index: 3, kind: output, shape index: {}]  }
   0x1   :  { %v524_v0 = vld [vmem:[%s749_s1 + $0x78] sm:$0xff]   ;;  %v526_v2 = vld [vmem:[%s749_s1 + $0x70] sm:$0xff]   ;;  %v528_v4 = vld [vmem:[%s749_s1 + $0x68] sm:$0xff]  }
   0x2   :  { %v525_v1 = vld [vmem:[%s749_s1 + $0x38] sm:$0xff]   ;;  %444 = vmatprep.subr.bf16.mxu0 %v524_v0  ;;  %508 = vmatprep.subr.bf16.mxu1 %v524_v0  ;;  %v527_v3 = vld [vmem:[%s749_s1 + $0x30] sm:$0xff]   ;;  %v529_v5 = vld [vmem:[%s749_s1 + $0x28] sm:$0xff]  }
   0x3   :  { %445 = vmatpush3.bf16.msra.mxu0 %v525_v1  ;;  %516 = vmatpush3.bf16.msra.mxu1 %v525_v1  ;;  %v530_v6 = vld [vmem:[%s749_s1 + $0x60] sm:$0xff]   ;;  %v532_v8 = vld [vmem:[%s749_s1 + $0x58] sm:$0xff]   ;;  %v534_v10 = vld [vmem:[%s749_s1 + $0x50] sm:$0xff]  }
   0x4   :  { %446 = vmatprep.subr.bf16.mxu0 %v526_v2  ;;  %509 = vmatprep.subr.bf16.mxu1 %v526_v2  ;;  %v531_v7 = vld [vmem:[%s749_s1 + $0x20] sm:$0xff]   ;;  %v533_v9 = vld [vmem:[%s749_s1 + $0x18] sm:$0xff]   ;;  %v535_v13 = vld [vmem:[%s749_s1 + $0x10] sm:$0xff]  }
   0x5   :  { %v542_v11 = vld [vmem:[%s750_s0 + $0x4] ss:$8 sps:$4 sm:$0xff]   ;;  %v540_v18 = vld [vmem:[%s750_s0] ss:$8 sps:$4 sm:$0xff]   ;;  %v546_v20 = vld [vmem:[%s750_s0 + $0x14] ss:$8 sps:$4 sm:$0xff]  }
   0x6   :  { %v545_v12 = vld [vmem:[%s750_s0 + $0x44] ss:$8 sps:$4 sm:$0xff]   ;;  %278 = vmatprep.mubr.bf16.mxu0 %v542_v11  ;;  %v543_v19 = vld [vmem:[%s750_s0 + $0x40] ss:$8 sps:$4 sm:$0xff]   ;;  %v548_v21 = vld [vmem:[%s750_s0 + $0x54] ss:$8 sps:$4 sm:$0xff]  }
   0x7   :  { %447 = vmatpush3.bf16.msra.mxu0 %v527_v3  ;;  %517 = vmatpush3.bf16.msra.mxu1 %v527_v3  ;;  %v536_v14 = vld [vmem:[%s749_s1 + $0x48] sm:$0xff]   ;;  %v538_v16 = vld [vmem:[%s749_s1 + $0x40] sm:$0xff]   ;;  %v550_v22 = vld [vmem:[%s750_s0 + $0x10] ss:$8 sps:$4 sm:$0xff]  }
   0x8   :  { %448 = vmatprep.subr.bf16.mxu0 %v528_v4  ;;  %510 = vmatprep.subr.bf16.mxu1 %v528_v4  ;;  %v537_v15 = vld [vmem:[%s749_s1 + $0x8] sm:$0xff]   ;;  %v539_v17 = vld [vmem:[%s749_s1] sm:$0xff]   ;;  %v551_v23 = vld [vmem:[%s750_s0 + $0x50] ss:$8 sps:$4 sm:$0xff]  }
   0x9   :  { %310 = vmatprep.mubr.bf16.mxu1 %v545_v12  ;;  %v552_v24 = vld [vmem:[%s750_s0 + $0x24] ss:$8 sps:$4 sm:$0xff]   ;;  %v556_v26 = vld [vmem:[%s750_s0 + $0x20] ss:$8 sps:$4 sm:$0xff]   ;;  %v558_v28 = vld [vmem:[%s750_s0 + $0x34] ss:$8 sps:$4 sm:$0xff]  }
   0xa   :  { %v554_v25 = vld [vmem:[%s750_s0 + $0x64] ss:$8 sps:$4 sm:$0xff]   ;;  %v557_v27 = vld [vmem:[%s750_s0 + $0x60] ss:$8 sps:$4 sm:$0xff]   ;;  %v560_v29 = vld [vmem:[%s750_s0 + $0x74] ss:$8 sps:$4 sm:$0xff]  }
   0xb   :  { %449 = vmatpush3.bf16.msra.mxu0 %v529_v5  ;;  %518 = vmatpush3.bf16.msra.mxu1 %v529_v5  ;;  %v562_v30 = vld [vmem:[%s750_s0 + $0x30] ss:$8 sps:$4 sm:$0xff]   ;;  %v683_v34 = vld [vmem:[%s751_s2] ss:$0 sm:$0xff] }
   0xc   :  { %450 = vmatprep.subr.bf16.mxu0 %v530_v6  ;;  %511 = vmatprep.subr.bf16.mxu1 %v530_v6  ;;  %v563_v31 = vld [vmem:[%s750_s0 + $0x70] ss:$8 sps:$4 sm:$0xff]  }
   0xf   :  { %451 = vmatpush3.bf16.msra.mxu0 %v531_v7  ;;  %519 = vmatpush3.bf16.msra.mxu1 %v531_v7 }
  0x10   :  { %452 = vmatprep.subr.bf16.mxu0 %v532_v8  ;;  %512 = vmatprep.subr.bf16.mxu1 %v532_v8 }
  0x13   :  { %453 = vmatpush3.bf16.msra.mxu0 %v533_v9  ;;  %520 = vmatpush3.bf16.msra.mxu1 %v533_v9 }
  0x14   :  { %454 = vmatprep.subr.bf16.mxu0 %v534_v10  ;;  %513 = vmatprep.subr.bf16.mxu1 %v534_v10 }
  0x17   :  { %455 = vmatpush3.bf16.msra.mxu0 %v535_v13  ;;  %521 = vmatpush3.bf16.msra.mxu1 %v535_v13 }
  0x18   :  { %456 = vmatprep.subr.bf16.mxu0 %v536_v14  ;;  %514 = vmatprep.subr.bf16.mxu1 %v536_v14 }
  0x1b   :  { %457 = vmatpush3.bf16.msra.mxu0 %v537_v15  ;;  %522 = vmatpush3.bf16.msra.mxu1 %v537_v15 }
  0x1c   :  { %458 = vmatprep.subr.bf16.mxu0 %v538_v16  ;;  %515 = vmatprep.subr.bf16.mxu1 %v538_v16 }
  0x1f   :  { %459 = vmatpush3.bf16.msra.mxu0 %v539_v17  ;;  %523 = vmatpush3.bf16.msra.mxu1 %v539_v17 }
  0x22   :  { %279 = vmatmul.mubr.bf16.vlgmr.msra.gmra.mxu0 %v540_v18  ;;  %311 = vmatmul.mubr.bf16.vlgmr.msra.gmra.mxu1 %v543_v19 }
  0x23   :  { %286 = vmatprep.mubr.bf16.mxu0 %v546_v20  ;;  %318 = vmatprep.mubr.bf16.mxu1 %v548_v21 }
  0x2a   :  { %287 = vmatmul.mubr.bf16.gmra.mxu0 %v550_v22  ;;  %319 = vmatmul.mubr.bf16.gmra.mxu1 %v551_v23 }
  0x2b   :  { %294 = vmatprep.mubr.bf16.mxu0 %v552_v24  ;;  %326 = vmatprep.mubr.bf16.mxu1 %v554_v25 }
  0x32   :  { %295 = vmatmul.mubr.bf16.gmra.mxu0 %v556_v26  ;;  %327 = vmatmul.mubr.bf16.gmra.mxu1 %v557_v27 }
  0x33   :  { %302 = vmatprep.mubr.bf16.mxu0 %v558_v28  ;;  %334 = vmatprep.mubr.bf16.mxu1 %v560_v29 }
  0x3a   :  { %303 = vmatmul.mubr.bf16.gmra.mxu0 %v562_v30  ;;  %335 = vmatmul.mubr.bf16.gmra.mxu1 %v563_v31 }
  0xe2   :  { %v460_v32 = vpop.f32.mrf.mxu0  ;;  %v484_v33 = vpop.f32.mrf.mxu1 }
  0xe4   :  { %v461_v35 = vpop.f32.mrf.mxu0  ;;  %v485_v36 = vpop.f32.mrf.mxu1 }
  0xe5   :  { %v462_v37 = vadd.f32 %v461_v35, %v460_v32  ;;  %v486_v38 = vadd.f32 %v485_v36, %v484_v33 }
  0xe6   :  { %v463_v39 = vpop.f32.mrf.mxu0  ;;  %v487_v40 = vpop.f32.mrf.mxu1 }
  0xe7   :  { %v281_v41 = vadd.f32 %v462_v37, %v683_v34  ;;  %v313_v42 = vadd.f32 %v486_v38, %v683_v34 }
  0xe8   :  { %v464_v43 = vpop.f32.mrf.mxu0  ;;  %v488_v44 = vpop.f32.mrf.mxu1 }
  0xe9   :  { %vm343_vm0 = vcmp.gt.f32.partialorder %v281_v41, 0.0  ;;  %v359_v45 = vmul.f32 0.2, %v281_v41  ;;  %vm351_vm1 = vcmp.gt.f32.partialorder %v313_v42, 0.0  ;;  %v367_v46 = vmul.f32 0.2, %v313_v42 }
  0xea   :  { %v465_v47 = vadd.f32 %v464_v43, %v463_v39  ;;  %v489_v48 = vadd.f32 %v488_v44, %v487_v40  ;;  %v466_v49 = vpop.f32.mrf.mxu0  ;;  %v490_v50 = vpop.f32.mrf.mxu1 }
  0xeb   :  { %v375_v51 = vsel %vm343_vm0, %v281_v41, %v359_v45  ;;  %v383_v52 = vsel %vm351_vm1, %v313_v42, %v367_v46 }
  0xec   :  { %391 = vst [vmem:[%s752_s3] sm:$0xff] %v375_v51  ;;  %399 = vst [vmem:[%s752_s3 + $0x40] sm:$0xff] %v383_v52  ;;  %v284_v53 = vadd.f32 %v465_v47, %v683_v34  ;;  %v316_v54 = vadd.f32 %v489_v48, %v683_v34  ;;  %v467_v55 = vpop.f32.mrf.mxu0  ;;  %v491_v56 = vpop.f32.mrf.mxu1 }
  0xed   :  { %v468_v57 = vadd.f32 %v467_v55, %v466_v49  ;;  %v492_v58 = vadd.f32 %v491_v56, %v490_v50 }
  0xee   :  { %vm344_vm2 = vcmp.gt.f32.partialorder %v284_v53, 0.0  ;;  %v360_v59 = vmul.f32 0.2, %v284_v53  ;;  %vm352_vm3 = vcmp.gt.f32.partialorder %v316_v54, 0.0  ;;  %v368_v60 = vmul.f32 0.2, %v316_v54  ;;  %v469_v61 = vpop.f32.mrf.mxu0  ;;  %v493_v62 = vpop.f32.mrf.mxu1 }
  0xef   :  { %v289_v63 = vadd.f32 %v468_v57, %v683_v34  ;;  %v321_v0 = vadd.f32 %v492_v58, %v683_v34 }
  0xf0   :  { %v376_v1 = vsel %vm344_vm2, %v284_v53, %v360_v59  ;;  %v384_v2 = vsel %vm352_vm3, %v316_v54, %v368_v60  ;;  %v470_v3 = vpop.f32.mrf.mxu0  ;;  %v494_v4 = vpop.f32.mrf.mxu1 }
  0xf1   :  { %392 = vst [vmem:[%s752_s3 + $0x8] sm:$0xff] %v376_v1  ;;  %400 = vst [vmem:[%s752_s3 + $0x48] sm:$0xff] %v384_v2  ;;  %vm345_vm4 = vcmp.gt.f32.partialorder %v289_v63, 0.0  ;;  %v361_v5 = vmul.f32 0.2, %v289_v63  ;;  %vm353_vm5 = vcmp.gt.f32.partialorder %v321_v0, 0.0  ;;  %v471_v7 = vadd.f32 %v470_v3, %v469_v61 }
  0xf2   :  { %v369_v6 = vmul.f32 0.2, %v321_v0  ;;  %v495_v8 = vadd.f32 %v494_v4, %v493_v62  ;;  %v472_v9 = vpop.f32.mrf.mxu0  ;;  %v496_v10 = vpop.f32.mrf.mxu1 }
  0xf3   :  { %v377_v11 = vsel %vm345_vm4, %v289_v63, %v361_v5  ;;  %v292_v13 = vadd.f32 %v471_v7, %v683_v34 }
  0xf4   :  { %v385_v12 = vsel %vm353_vm5, %v321_v0, %v369_v6  ;;  %393 = vst [vmem:[%s752_s3 + $0x10] sm:$0xff] %v377_v11  ;;  %v324_v14 = vadd.f32 %v495_v8, %v683_v34  ;;  %v473_v15 = vpop.f32.mrf.mxu0  ;;  %v497_v16 = vpop.f32.mrf.mxu1 }
  0xf5   :  { %401 = vst [vmem:[%s752_s3 + $0x50] sm:$0xff] %v385_v12  ;;  %v474_v17 = vadd.f32 %v473_v15, %v472_v9  ;;  %v498_v18 = vadd.f32 %v497_v16, %v496_v10  ;;  %vm346_vm6 = vcmp.gt.f32.partialorder %v292_v13, 0.0  ;;  %v362_v19 = vmul.f32 0.2, %v292_v13 }
  0xf6   :  { %vm354_vm7 = vcmp.gt.f32.partialorder %v324_v14, 0.0  ;;  %v370_v20 = vmul.f32 0.2, %v324_v14  ;;  %v475_v21 = vpop.f32.mrf.mxu0  ;;  %v499_v22 = vpop.f32.mrf.mxu1 }
  0xf7   :  { %v297_v23 = vadd.f32 %v474_v17, %v683_v34  ;;  %v329_v24 = vadd.f32 %v498_v18, %v683_v34  ;;  %v378_v25 = vsel %vm346_vm6, %v292_v13, %v362_v19 }
  0xf8   :  { %v386_v26 = vsel %vm354_vm7, %v324_v14, %v370_v20  ;;  %v476_v27 = vpop.f32.mrf.mxu0  ;;  %v500_v28 = vpop.f32.mrf.mxu1  ;;  %394 = vst [vmem:[%s752_s3 + $0x18] sm:$0xff] %v378_v25 }
  0xf9   :  { %402 = vst [vmem:[%s752_s3 + $0x58] sm:$0xff] %v386_v26  ;;  %vm347_vm8 = vcmp.gt.f32.partialorder %v297_v23, 0.0  ;;  %v363_v29 = vmul.f32 0.2, %v297_v23  ;;  %vm355_vm9 = vcmp.gt.f32.partialorder %v329_v24, 0.0  ;;  %v477_v31 = vadd.f32 %v476_v27, %v475_v21 }
  0xfa   :  { %v371_v30 = vmul.f32 0.2, %v329_v24  ;;  %v501_v32 = vadd.f32 %v500_v28, %v499_v22  ;;  %v478_v33 = vpop.f32.mrf.mxu0  ;;  %v502_v35 = vpop.f32.mrf.mxu1 }
  0xfb   :  { %v379_v36 = vsel %vm347_vm8, %v297_v23, %v363_v29  ;;  %v300_v38 = vadd.f32 %v477_v31, %v683_v34 }
  0xfc   :  { %v387_v37 = vsel %vm355_vm9, %v329_v24, %v371_v30  ;;  %395 = vst [vmem:[%s752_s3 + $0x20] sm:$0xff] %v379_v36  ;;  %v332_v39 = vadd.f32 %v501_v32, %v683_v34  ;;  %v479_v40 = vpop.f32.mrf.mxu0  ;;  %v503_v41 = vpop.f32.mrf.mxu1 }
  0xfd   :  { %403 = vst [vmem:[%s752_s3 + $0x60] sm:$0xff] %v387_v37  ;;  %v480_v42 = vadd.f32 %v479_v40, %v478_v33  ;;  %v504_v43 = vadd.f32 %v503_v41, %v502_v35  ;;  %vm348_vm10 = vcmp.gt.f32.partialorder %v300_v38, 0.0  ;;  %v364_v44 = vmul.f32 0.2, %v300_v38 }
  0xfe   :  { %vm356_vm11 = vcmp.gt.f32.partialorder %v332_v39, 0.0  ;;  %v372_v45 = vmul.f32 0.2, %v332_v39  ;;  %v481_v46 = vpop.f32.mrf.mxu0  ;;  %v505_v47 = vpop.f32.mrf.mxu1 }
  0xff   :  { %v305_v48 = vadd.f32 %v480_v42, %v683_v34  ;;  %v337_v49 = vadd.f32 %v504_v43, %v683_v34  ;;  %v380_v50 = vsel %vm348_vm10, %v300_v38, %v364_v44 }
 0x100   :  { %v388_v51 = vsel %vm356_vm11, %v332_v39, %v372_v45  ;;  %v482_v52 = vpop.f32.mrf.mxu0  ;;  %v506_v53 = vpop.f32.mrf.mxu1  ;;  %396 = vst [vmem:[%s752_s3 + $0x28] sm:$0xff] %v380_v50 }
 0x101   :  { %404 = vst [vmem:[%s752_s3 + $0x68] sm:$0xff] %v388_v51  ;;  %vm349_vm12 = vcmp.gt.f32.partialorder %v305_v48, 0.0  ;;  %v365_v54 = vmul.f32 0.2, %v305_v48  ;;  %vm357_vm13 = vcmp.gt.f32.partialorder %v337_v49, 0.0  ;;  %v483_v56 = vadd.f32 %v482_v52, %v481_v46 }
 0x102   :  { %v373_v55 = vmul.f32 0.2, %v337_v49  ;;  %v507_v57 = vadd.f32 %v506_v53, %v505_v47 }
 0x103   :  { %v381_v58 = vsel %vm349_vm12, %v305_v48, %v365_v54  ;;  %v308_v60 = vadd.f32 %v483_v56, %v683_v34 }
 0x104   :  { %v389_v59 = vsel %vm357_vm13, %v337_v49, %v373_v55  ;;  %397 = vst [vmem:[%s752_s3 + $0x30] sm:$0xff] %v381_v58  ;;  %v340_v61 = vadd.f32 %v507_v57, %v683_v34 }
 0x105   :  { %405 = vst [vmem:[%s752_s3 + $0x70] sm:$0xff] %v389_v59  ;;  %vm350_vm14 = vcmp.gt.f32.partialorder %v308_v60, 0.0  ;;  %v366_v62 = vmul.f32 0.2, %v308_v60 }
 0x106   :  { %vm358_vm15 = vcmp.gt.f32.partialorder %v340_v61, 0.0  ;;  %v374_v63 = vmul.f32 0.2, %v340_v61 }
 0x107   :  { %v382_v0 = vsel %vm350_vm14, %v308_v60, %v366_v62 }
 0x108   :  { %v390_v1 = vsel %vm358_vm15, %v340_v61, %v374_v63  ;;  %398 = vst [vmem:[%s752_s3 + $0x38] sm:$0xff] %v382_v0 }
 0x109   :  { %406 = vst [vmem:[%s752_s3 + $0x78] sm:$0xff] %v390_v1 }

// kernel: tile.54
= control target key start
LH: loop header
LB: loop body
LE: loop exit
PB: predicated region body
PF: predicated region fallthrough
CT: control target
= control target key end

     0   :  { %s22_s0 = inlined_call_operand.vmem [shape: f32[3], index: 0, kind: input, shape index: {}]   ;;  %s23_s1 = inlined_call_operand.vmem [shape: f32[4,3], index: 1, kind: output, shape index: {}]  }
   0x1   :  { %v4_v0 = vld [vmem:[%s22_s0] ss:$0 sm:$0xff] }
   0x2   :  { %5 = vst [vmem:[%s23_s1] sm:$0xf] %v4_v0 }

// kernel: tile.55
= control target key start
LH: loop header
LB: loop body
LE: loop exit
PB: predicated region body
PF: predicated region fallthrough
CT: control target
= control target key end

     0   :  { %vm8_vm0 = vcmask 23552   ;;  %s40_s8 = smov 3   ;;  %s41_s9 = smov 6   ;;  %vm14_vm1 = vcmask 97352   ;;  %vm20_vm2 = vcmask 72752   ;;  %vm26_vm3 = vcmask 48152   ;;  %s58_s0 = inlined_call_operand.vmem [shape: f32[4,3], index: 0, kind: input, shape index: {}]   ;;  %s59_s1 = inlined_call_operand.vmem [shape: f32[12], index: 1, kind: output, shape index: {}]  }
   0x1   :  { %v5_v0 = vld [vmem:[%s58_s0] sm:$0xf]  ;;  %s39_s0 = smov 9  }
   0x2   :  { %6 = vst [vmem:[#allocation1] sm:$0xf] %v5_v0 }
   0x9   :  { %v11_v1 = vld [vmem:[#allocation1 + $0x3] sm:$0x1]   ;;  %v23_v2 = vld [vmem:[#allocation1 + $0x1] sm:$0x1]   ;;  %v7_v3 = vld [vmem:[#allocation1] sm:$0x1]  }
   0xa   :  { %12 = vrot.lane.b32.xlu0 %v11_v1, %s39_s0  ;;  %24 = vrot.lane.b32.xlu1 %v23_v2, %s40_s8  ;;  %v17_v4 = vld [vmem:[#allocation1 + $0x2] sm:$0x1]   ;;  %9 = vst.msk [vmem:[#allocation0] sm:$0x1] %vm8_vm0, %v7_v3  }
   0xe   :  { %18 = vrot.lane.b32.xlu0 %v17_v4, %s41_s9 }
  0x7c   :  { %v13_v5 = vpop.permute.xlu0 %12   ;;  %v25_v6 = vpop.permute.xlu1 %24  }
  0x7d   :  { %15 = vst.msk [vmem:[#allocation0] sm:$0x1] %vm14_vm1, %v13_v5  }
  0x80   :  { %v19_v7 = vpop.permute.xlu0 %18  }
  0x81   :  { %21 = vst.msk [vmem:[#allocation0] sm:$0x1] %vm20_vm2, %v19_v7  }
  0x82   :  { %27 = vst.msk [vmem:[#allocation0] sm:$0x1] %vm26_vm3, %v25_v6  }
  0x89   :  { %v32_v8 = vld [vmem:[#allocation0] sm:$0x1] }
  0x8a   :  { %35 = vst [vmem:[%s59_s1] sm:$0x1] %v32_v8 }

// kernel: autoencoder_conv_forward.19
= control target key start
LH: loop header
LB: loop body
LE: loop exit
PB: predicated region body
PF: predicated region fallthrough
CT: control target
= control target key end

     0   :  { %s1034_s12 = smov 0   ;;  %s1036_s13 = smov 0   ;;  %s1184_s0 = inlined_call_operand.vmem [shape: bf16[512,128], index: 0, kind: input, shape index: {}]   ;;  %s1185_s1 = inlined_call_operand.vmem [shape: bf16[128,128], index: 1, kind: input, shape index: {}]   ;;  %s1186_s2 = inlined_call_operand.vmem [shape: f32[1,128], index: 2, kind: input, shape index: {}]   ;;  %s1187_s3 = inlined_call_operand.vmem [shape: f32[512,128], index: 3, kind: output, shape index: {}]  }
   0x1   :  { %s1038_s14 = smov 0  }
   0x2 LB: > { %s25_s15 = sadd.s32 1, %s1008_s13  ;;  %p758_p0 = scmp.ge.s32.totalorder %s1012_s14, 1  ;;  %s1012_s14 = sphi %s1038_s14, %s13_s14   ;;  %s1008_s13 = sphi %s1036_s13, %s1189_s13   ;;  %s1004_s12 = sphi %s1034_s12, %s1188_s12  }
   0x3   : > { %p27_p1 = scmp.ge.s32.totalorder %s25_s15, 2  ;;  %p169_p2 = scmp.lt.s32.totalorder %s1012_s14, 3 }
   0x5   : > { %s1191_s15 = smov (%p27_p1, %s25_s15), 0  ;;  %p170_p3 = pnand %p758_p0, %p169_p2 }
   0x6   : > { %s759_s18 = sshll.u32 (!%p170_p3), %s1004_s12, 5 }
   0x7   : > { %173 = sbr.rel (%p170_p3) target bundleno = 286 (0x11e), region = 32  ;;  %p204_p4 = scmp.lt.s32.totalorder (!%p170_p3), %s759_s18, 63 }
   0xc   : > { %v902_v0 = vld [vmem:[%s1185_s1 + $0x38] sm:$0xff]   ;;  %v903_v1 = vld [vmem:[%s1185_s1 + $0x30] sm:$0xff]   ;;  %s1193_s18 = smov (!%p204_p4, %s759_s18), 63  ;;  %v904_v2 = vld [vmem:[%s1185_s1 + $0x28] sm:$0xff]  }
   0xd   : > { %814 = vmatprep.subr.bf16.mxu0 %v902_v0  ;;  %862 = vmatprep.subr.bf16.mxu1 %v902_v0  ;;  %s760_s23 = sshll.u32 %s1193_s18, 2  ;;  %v905_v3 = vld [vmem:[%s1185_s1 + $0x20] sm:$0xff]   ;;  %v906_v6 = vld [vmem:[%s1185_s1 + $0x18] sm:$0xff]   ;;  %v907_v7 = vld [vmem:[%s1185_s1 + $0x10] sm:$0xff]   ;;  %s762_s12 = sshll.u32 %s1193_s18, 3 }
   0xe   : > { %815 = vmatpush3.bf16.msra.mxu0 %v902_v0  ;;  %870 = vmatpush3.bf16.msra.mxu1 %v902_v0  ;;  %s1067_s26 = scalar_lea.vmem %s1184_s0, %s760_s23  ;;  %v908_v8 = vld [vmem:[%s1185_s1 + $0x8] sm:$0xff]   ;;  %v909_v9 = vld [vmem:[%s1185_s1] sm:$0xff]   ;;  %s1123_s19 = scalar_lea.vmem %s1187_s3, %s762_s12 }
   0xf   : > { %816 = vmatprep.subr.bf16.mxu0 %v903_v1  ;;  %863 = vmatprep.subr.bf16.mxu1 %v903_v1  ;;  %v910_v4 = vld [vmem:[%s1067_s26] sm:$0xff]   ;;  %v912_v10 = vld [vmem:[%s1067_s26 + $0x8] sm:$0xff]   ;;  %v914_v12 = vld [vmem:[%s1067_s26 + $0x10] sm:$0xff]  }
  0x10   : > { %v911_v5 = vld [vmem:[%s1067_s26 + $0x40] sm:$0xff]   ;;  %830 = vmatprep.mubr.bf16.mxu0 %v910_v4  ;;  %v913_v11 = vld [vmem:[%s1067_s26 + $0x48] sm:$0xff]   ;;  %v915_v13 = vld [vmem:[%s1067_s26 + $0x50] sm:$0xff]  }
  0x11   : > { %846 = vmatprep.mubr.bf16.mxu1 %v911_v5  ;;  %v916_v14 = vld [vmem:[%s1067_s26 + $0x18] sm:$0xff]   ;;  %v918_v16 = vld [vmem:[%s1067_s26 + $0x20] sm:$0xff]   ;;  %v920_v18 = vld [vmem:[%s1067_s26 + $0x28] sm:$0xff]  }
  0x12   : > { %817 = vmatpush3.bf16.msra.mxu0 %v903_v1  ;;  %871 = vmatpush3.bf16.msra.mxu1 %v903_v1  ;;  %v917_v15 = vld [vmem:[%s1067_s26 + $0x58] sm:$0xff]   ;;  %v919_v17 = vld [vmem:[%s1067_s26 + $0x60] sm:$0xff]   ;;  %v921_v19 = vld [vmem:[%s1067_s26 + $0x68] sm:$0xff]  }
  0x13   : > { %818 = vmatprep.subr.bf16.mxu0 %v904_v2  ;;  %864 = vmatprep.subr.bf16.mxu1 %v904_v2  ;;  %v922_v20 = vld [vmem:[%s1067_s26 + $0x30] sm:$0xff]   ;;  %v924_v22 = vld [vmem:[%s1067_s26 + $0x38] sm:$0xff]   ;;  %v1103_v24 = vld [vmem:[%s1186_s2] ss:$0 sm:$0xff] }
  0x14   : > { %v923_v21 = vld [vmem:[%s1067_s26 + $0x70] sm:$0xff]   ;;  %v925_v23 = vld [vmem:[%s1067_s26 + $0x78] sm:$0xff]  }
  0x16   : > { %819 = vmatpush3.bf16.msra.mxu0 %v904_v2  ;;  %872 = vmatpush3.bf16.msra.mxu1 %v904_v2 }
  0x17   : > { %820 = vmatprep.subr.bf16.mxu0 %v905_v3  ;;  %865 = vmatprep.subr.bf16.mxu1 %v905_v3 }
  0x1a   : > { %821 = vmatpush3.bf16.msra.mxu0 %v905_v3  ;;  %873 = vmatpush3.bf16.msra.mxu1 %v905_v3 }
  0x1b   : > { %822 = vmatprep.subr.bf16.mxu0 %v906_v6  ;;  %866 = vmatprep.subr.bf16.mxu1 %v906_v6 }
  0x1e   : > { %823 = vmatpush3.bf16.msra.mxu0 %v906_v6  ;;  %874 = vmatpush3.bf16.msra.mxu1 %v906_v6 }
  0x1f   : > { %824 = vmatprep.subr.bf16.mxu0 %v907_v7  ;;  %867 = vmatprep.subr.bf16.mxu1 %v907_v7 }
  0x22   : > { %825 = vmatpush3.bf16.msra.mxu0 %v907_v7  ;;  %875 = vmatpush3.bf16.msra.mxu1 %v907_v7 }
  0x23   : > { %826 = vmatprep.subr.bf16.mxu0 %v908_v8  ;;  %868 = vmatprep.subr.bf16.mxu1 %v908_v8 }
  0x26   : > { %827 = vmatpush3.bf16.msra.mxu0 %v908_v8  ;;  %876 = vmatpush3.bf16.msra.mxu1 %v908_v8 }
  0x27   : > { %828 = vmatprep.subr.bf16.mxu0 %v909_v9  ;;  %869 = vmatprep.subr.bf16.mxu1 %v909_v9 }
  0x2a   : > { %829 = vmatpush3.bf16.msra.mxu0 %v909_v9  ;;  %877 = vmatpush3.bf16.msra.mxu1 %v909_v9 }
  0x2d   : > { %831 = vmatmul.mubr.bf16.vlgmr.msra.gmra.mxu0 %v912_v10  ;;  %847 = vmatmul.mubr.bf16.vlgmr.msra.gmra.mxu1 %v913_v11 }
  0x2e   : > { %834 = vmatprep.mubr.bf16.mxu0 %v914_v12  ;;  %850 = vmatprep.mubr.bf16.mxu1 %v915_v13 }
  0x35   : > { %835 = vmatmul.mubr.bf16.gmra.mxu0 %v916_v14  ;;  %851 = vmatmul.mubr.bf16.gmra.mxu1 %v917_v15 }
  0x36   : > { %838 = vmatprep.mubr.bf16.mxu0 %v918_v16  ;;  %854 = vmatprep.mubr.bf16.mxu1 %v919_v17 }
  0x3d   : > { %839 = vmatmul.mubr.bf16.gmra.mxu0 %v920_v18  ;;  %855 = vmatmul.mubr.bf16.gmra.mxu1 %v921_v19 }
  0x3e   : > { %842 = vmatprep.mubr.bf16.mxu0 %v922_v20  ;;  %858 = vmatprep.mubr.bf16.mxu1 %v923_v21 }
  0x45   : > { %843 = vmatmul.mubr.bf16.gmra.mxu0 %v924_v22  ;;  %859 = vmatmul.mubr.bf16.gmra.mxu1 %v925_v23 }
  0xed   : > { %v832_v25 = vpop.f32.mrf.mxu0  ;;  %v848_v26 = vpop.f32.mrf.mxu1 }
  0xee   : > { %v468_v27 = vadd.f32 %v832_v25, %v1103_v24  ;;  %v532_v28 = vadd.f32 %v848_v26, %v1103_v24 }
  0xef   : > { %v459_v29 = vpop.f32.mrf.mxu0  ;;  %v523_v30 = vpop.f32.mrf.mxu1 }
  0xf0   : > { %926 = vtanh.f32 %v468_v27  ;;  %v460_v31 = vadd.f32 %v1103_v24, %v459_v29  ;;  %v524_v32 = vadd.f32 %v1103_v24, %v523_v30 }
  0xf1   : > { %928 = vtanh.f32 %v532_v28  ;;  %v833_v33 = vpop.f32.mrf.mxu0  ;;  %v849_v34 = vpop.f32.mrf.mxu1 }
  0xf2   : > { %930 = vtanh.f32 %v460_v31  ;;  %v471_v35 = vadd.f32 %v833_v33, %v1103_v24  ;;  %v535_v36 = vadd.f32 %v849_v34, %v1103_v24 }
  0xf3   : > { %932 = vtanh.f32 %v524_v32  ;;  %v462_v37 = vpop.f32.mrf.mxu0  ;;  %v526_v38 = vpop.f32.mrf.mxu1 }
  0xf4   : > { %934 = vtanh.f32 %v471_v35  ;;  %v463_v39 = vadd.f32 %v1103_v24, %v462_v37  ;;  %v527_v40 = vadd.f32 %v1103_v24, %v526_v38 }
  0xf5   : > { %936 = vtanh.f32 %v535_v36  ;;  %v836_v41 = vpop.f32.mrf.mxu0  ;;  %v852_v42 = vpop.f32.mrf.mxu1 }
  0xf6   : > { %938 = vtanh.f32 %v463_v39  ;;  %v484_v43 = vadd.f32 %v836_v41, %v1103_v24  ;;  %v548_v44 = vadd.f32 %v852_v42, %v1103_v24 }
  0xf7   : > { %940 = vtanh.f32 %v527_v40  ;;  %v475_v45 = vpop.f32.mrf.mxu0  ;;  %v539_v46 = vpop.f32.mrf.mxu1 }
  0xf8   : > { %942 = vtanh.f32 %v484_v43  ;;  %v476_v47 = vadd.f32 %v1103_v24, %v475_v45  ;;  %v540_v48 = vadd.f32 %v1103_v24, %v539_v46 }
  0xf9   : > { %944 = vtanh.f32 %v548_v44  ;;  %v837_v49 = vpop.f32.mrf.mxu0  ;;  %v853_v50 = vpop.f32.mrf.mxu1 }
  0xfa   : > { %946 = vtanh.f32 %v476_v47  ;;  %v487_v51 = vadd.f32 %v837_v49, %v1103_v24  ;;  %v551_v52 = vadd.f32 %v853_v50, %v1103_v24 }
  0xfb   : > { %948 = vtanh.f32 %v540_v48  ;;  %v478_v53 = vpop.f32.mrf.mxu0  ;;  %v542_v54 = vpop.f32.mrf.mxu1 }
  0xfc   : > { %950 = vtanh.f32 %v487_v51  ;;  %v479_v55 = vadd.f32 %v1103_v24, %v478_v53  ;;  %v543_v56 = vadd.f32 %v1103_v24, %v542_v54 }
  0xfd   : > { %v927_v57 = vpop.eup %926  ;;  %952 = vtanh.f32 %v551_v52  ;;  %v840_v58 = vpop.f32.mrf.mxu0 }
  0xfe   : > { %v856_v59 = vpop.f32.mrf.mxu1  ;;  %v929_v60 = vpop.eup %928  ;;  %620 = vst [vmem:[%s1123_s19 + $0x10] sm:$0xff] %v927_v57  ;;  %954 = vtanh.f32 %v479_v55  ;;  %v500_v61 = vadd.f32 %v840_v58, %v1103_v24 }
  0xff   : > { %v564_v62 = vadd.f32 %v856_v59, %v1103_v24  ;;  %v931_v63 = vpop.eup %930  ;;  %636 = vst [vmem:[%s1123_s19 + $0x90] sm:$0xff] %v929_v60  ;;  %956 = vtanh.f32 %v543_v56  ;;  %v491_v0 = vpop.f32.mrf.mxu0 }
 0x100   : > { %v555_v1 = vpop.f32.mrf.mxu1  ;;  %v933_v2 = vpop.eup %932  ;;  %618 = vst [vmem:[%s1123_s19] sm:$0xff] %v931_v63  ;;  %958 = vtanh.f32 %v500_v61  ;;  %v492_v3 = vadd.f32 %v1103_v24, %v491_v0 }
 0x101   : > { %v556_v4 = vadd.f32 %v1103_v24, %v555_v1  ;;  %v935_v5 = vpop.eup %934  ;;  %634 = vst [vmem:[%s1123_s19 + $0x80] sm:$0xff] %v933_v2  ;;  %960 = vtanh.f32 %v564_v62  ;;  %v841_v6 = vpop.f32.mrf.mxu0 }
 0x102   : > { %v857_v7 = vpop.f32.mrf.mxu1  ;;  %v937_v8 = vpop.eup %936  ;;  %621 = vst [vmem:[%s1123_s19 + $0x18] sm:$0xff] %v935_v5  ;;  %962 = vtanh.f32 %v492_v3  ;;  %v503_v9 = vadd.f32 %v841_v6, %v1103_v24 }
 0x103   : > { %v567_v10 = vadd.f32 %v857_v7, %v1103_v24  ;;  %v939_v11 = vpop.eup %938  ;;  %637 = vst [vmem:[%s1123_s19 + $0x98] sm:$0xff] %v937_v8  ;;  %964 = vtanh.f32 %v556_v4  ;;  %v494_v12 = vpop.f32.mrf.mxu0 }
 0x104   : > { %v558_v13 = vpop.f32.mrf.mxu1  ;;  %v941_v14 = vpop.eup %940  ;;  %619 = vst [vmem:[%s1123_s19 + $0x8] sm:$0xff] %v939_v11  ;;  %966 = vtanh.f32 %v503_v9  ;;  %v495_v15 = vadd.f32 %v1103_v24, %v494_v12 }
 0x105   : > { %v559_v16 = vadd.f32 %v1103_v24, %v558_v13  ;;  %v943_v17 = vpop.eup %942  ;;  %635 = vst [vmem:[%s1123_s19 + $0x88] sm:$0xff] %v941_v14  ;;  %968 = vtanh.f32 %v567_v10  ;;  %v844_v18 = vpop.f32.mrf.mxu0 }
 0x106   : > { %v860_v19 = vpop.f32.mrf.mxu1  ;;  %v945_v20 = vpop.eup %944  ;;  %624 = vst [vmem:[%s1123_s19 + $0x30] sm:$0xff] %v943_v17  ;;  %970 = vtanh.f32 %v495_v15  ;;  %v516_v21 = vadd.f32 %v844_v18, %v1103_v24 }
 0x107   : > { %v580_v22 = vadd.f32 %v860_v19, %v1103_v24  ;;  %v947_v23 = vpop.eup %946  ;;  %640 = vst [vmem:[%s1123_s19 + $0xb0] sm:$0xff] %v945_v20  ;;  %972 = vtanh.f32 %v559_v16  ;;  %v507_v25 = vpop.f32.mrf.mxu0 }
 0x108   : > { %v571_v26 = vpop.f32.mrf.mxu1  ;;  %v949_v27 = vpop.eup %948  ;;  %622 = vst [vmem:[%s1123_s19 + $0x20] sm:$0xff] %v947_v23  ;;  %974 = vtanh.f32 %v516_v21  ;;  %v508_v28 = vadd.f32 %v1103_v24, %v507_v25 }
 0x109   : > { %v572_v29 = vadd.f32 %v1103_v24, %v571_v26  ;;  %v951_v30 = vpop.eup %950  ;;  %638 = vst [vmem:[%s1123_s19 + $0xa0] sm:$0xff] %v949_v27  ;;  %976 = vtanh.f32 %v580_v22  ;;  %v845_v31 = vpop.f32.mrf.mxu0 }
 0x10a   : > { %v861_v32 = vpop.f32.mrf.mxu1  ;;  %v953_v33 = vpop.eup %952  ;;  %625 = vst [vmem:[%s1123_s19 + $0x38] sm:$0xff] %v951_v30  ;;  %978 = vtanh.f32 %v508_v28  ;;  %v519_v34 = vadd.f32 %v845_v31, %v1103_v24 }
 0x10b   : > { %v583_v35 = vadd.f32 %v861_v32, %v1103_v24  ;;  %v955_v36 = vpop.eup %954  ;;  %641 = vst [vmem:[%s1123_s19 + $0xb8] sm:$0xff] %v953_v33  ;;  %980 = vtanh.f32 %v572_v29  ;;  %v510_v37 = vpop.f32.mrf.mxu0 }
 0x10c   : > { %v574_v38 = vpop.f32.mrf.mxu1  ;;  %v957_v39 = vpop.eup %956  ;;  %623 = vst [vmem:[%s1123_s19 + $0x28] sm:$0xff] %v955_v36  ;;  %982 = vtanh.f32 %v519_v34  ;;  %v511_v40 = vadd.f32 %v1103_v24, %v510_v37 }
 0x10d   : > { %v575_v41 = vadd.f32 %v1103_v24, %v574_v38  ;;  %v959_v42 = vpop.eup %958  ;;  %639 = vst [vmem:[%s1123_s19 + $0xa8] sm:$0xff] %v957_v39  ;;  %984 = vtanh.f32 %v583_v35 }
 0x10e   : > { %v961_v43 = vpop.eup %960  ;;  %628 = vst [vmem:[%s1123_s19 + $0x50] sm:$0xff] %v959_v42  ;;  %986 = vtanh.f32 %v511_v40 }
 0x10f   : > { %v963_v44 = vpop.eup %962  ;;  %644 = vst [vmem:[%s1123_s19 + $0xd0] sm:$0xff] %v961_v43  ;;  %988 = vtanh.f32 %v575_v41 }
 0x110   : > { %v965_v45 = vpop.eup %964  ;;  %626 = vst [vmem:[%s1123_s19 + $0x40] sm:$0xff] %v963_v44 }
 0x111   : > { %v967_v46 = vpop.eup %966  ;;  %642 = vst [vmem:[%s1123_s19 + $0xc0] sm:$0xff] %v965_v45 }
 0x112   : > { %v969_v24 = vpop.eup %968  ;;  %629 = vst [vmem:[%s1123_s19 + $0x58] sm:$0xff] %v967_v46 }
 0x113   : > { %v971_v47 = vpop.eup %970  ;;  %645 = vst [vmem:[%s1123_s19 + $0xd8] sm:$0xff] %v969_v24 }
 0x114   : > { %v973_v48 = vpop.eup %972  ;;  %627 = vst [vmem:[%s1123_s19 + $0x48] sm:$0xff] %v971_v47 }
 0x115   : > { %v975_v49 = vpop.eup %974  ;;  %643 = vst [vmem:[%s1123_s19 + $0xc8] sm:$0xff] %v973_v48 }
 0x116   : > { %v977_v50 = vpop.eup %976  ;;  %632 = vst [vmem:[%s1123_s19 + $0x70] sm:$0xff] %v975_v49 }
 0x117   : > { %v979_v51 = vpop.eup %978  ;;  %648 = vst [vmem:[%s1123_s19 + $0xf0] sm:$0xff] %v977_v50 }
 0x118   : > { %v981_v52 = vpop.eup %980  ;;  %630 = vst [vmem:[%s1123_s19 + $0x60] sm:$0xff] %v979_v51 }
 0x119   : > { %v983_v53 = vpop.eup %982  ;;  %646 = vst [vmem:[%s1123_s19 + $0xe0] sm:$0xff] %v981_v52 }
 0x11a   : > { %v985_v54 = vpop.eup %984  ;;  %633 = vst [vmem:[%s1123_s19 + $0x78] sm:$0xff] %v983_v53 }
 0x11b   : > { %v987_v55 = vpop.eup %986  ;;  %649 = vst [vmem:[%s1123_s19 + $0xf8] sm:$0xff] %v985_v54 }
 0x11c   : > { %v989_v56 = vpop.eup %988  ;;  %631 = vst [vmem:[%s1123_s19 + $0x68] sm:$0xff] %v987_v55 }
 0x11d   : > { %647 = vst [vmem:[%s1123_s19 + $0xe8] sm:$0xff] %v989_v56 }
 0x11e PF: > { %s13_s14 = sadd.s32 1, %s1012_s14   ;;  %s1188_s12 = smov %s1008_s13 }
 0x11f   : > { %p10_p5 = scmp.ge.s32.totalorder %s13_s14, 4   ;;  %s1189_s13 = smov %s1191_s15 }
 0x121   :  { %12 = sbr.rel (!%p10_p5) target bundleno = 2 (0x2), region = 68 }

</bundles_post_ra>
